<compile_context>
chip_gen: v7x
topology: tpu7x:2x2x1
jax: 0.10.0
libtpu: 0.0.40
codegen_flags: <defaults>
</compile_context>

<pallas_src>
import functools

import jax
import jax.numpy as jnp
from jax import lax
from jax.experimental import pallas as pl
from jax.experimental.pallas import tpu as pltpu


# ------------------------------ Pallas kernel -------------------------------

def mhsa_kernel(xq_ref, xkv_ref, wq_ref, bq_ref, wkv_ref, bkv_ref,
                wf_ref, bf_ref, o_ref, ctx_ref, *,
                num_heads, dim_qk, dim_vh, compute_dtype, approx_recip):
    # xq_ref : (1, tq, Din)  query rows (already compute dtype)
    # xkv_ref: (1, N,  Din)  full sequence for keys/values
    # wq_ref : (Din, H*Dqk)  head-stacked Q weights, 1/sqrt(Dqk) pre-folded
    # bq_ref : (1, H*Dqk)    f32, 1/sqrt(Dqk) pre-folded
    # wkv_ref: (Din, H*Dqk + dim_v)  head-stacked K|V weights (single matmul)
    # bkv_ref: (1, H*Dqk + dim_v)    f32
    # wf_ref : (dim_v, dim_v)  fusion Linear (x @ W convention), bf_ref (1, dim_v)
    # o_ref  : (1, tq, dim_v)
    # ctx_ref: (tq, dim_v) f32 VMEM scratch holding the concatenated head outputs
    f32 = jnp.float32
    x_q = xq_ref[0]                                          # (tq, Din)
    x_kv = xkv_ref[0]                                        # (N,  Din)

    # Two lane-dense projection matmuls total (Q on the query tile, fused K|V on
    # the full sequence); accumulate in f32, add f32 biases.
    q_all = jnp.dot(x_q, wq_ref[...], preferred_element_type=f32) + bq_ref[...]
    kv_all = jnp.dot(x_kv, wkv_ref[...], preferred_element_type=f32) + bkv_ref[...]
    hk = num_heads * dim_qk
    k_all = kv_all[:, :hk]
    v_all = kv_all[:, hk:]

    # Static unroll over heads (H is small here).
    # TODO(synk): for large H switch to lax.fori_loop with pl.ds slices so the
    # per-head working set is bounded (avoids vreg spills).
    for h in range(num_heads):
        q = q_all[:, h * dim_qk:(h + 1) * dim_qk].astype(compute_dtype)
        k = k_all[:, h * dim_qk:(h + 1) * dim_qk].astype(compute_dtype)
        v = v_all[:, h * dim_vh:(h + 1) * dim_vh].astype(compute_dtype)

        # scores[i, j] = <q_i, k_j>; 1/sqrt(Dqk) already folded into Wq/bq.
        # Contract the LAST axis of both operands -> no K transpose / relayout.
        s = lax.dot_general(q, k, (((1,), (1,)), ((), ())),
                            preferred_element_type=f32)

        # softmax over keys (== PyTorch dim=2), kept in f32.
        m = jnp.max(s, axis=-1, keepdims=True)
        p = jnp.exp(s - m)
        inv_l = pl.reciprocal(jnp.sum(p, axis=-1, keepdims=True),
                              approx=approx_recip)
        att = (p * inv_l).astype(compute_dtype)

        # Write this head's context straight into its lane slice of the VMEM
        # scratch (replaces the head_outs list + jnp.concatenate relayout).
        ctx_ref[:, h * dim_vh:(h + 1) * dim_vh] = jnp.dot(
            att, v, preferred_element_type=f32)

    # Fused output Linear epilogue off the scratch (no second kernel / HBM trip).
    out = jnp.dot(ctx_ref[...].astype(compute_dtype), wf_ref[...],
                  preferred_element_type=f32) + bf_ref[...]
    o_ref[0] = out.astype(o_ref.dtype)


# ------------------------------- host wrapper --------------------------------

def multihead_self_attention(feat, params, *, num_heads, dim_qk, dim_v,
                             precise=False, q_tile=256):
    """feat: (B, N, dim_in) float32. Returns (B, N, dim_v) float32.

    precise=True : f32 MXU operands + exact reciprocal (tight numerics).
    precise=False: bf16 operands / bf16 input DMA with f32 accumulation + EUP
                   approx reciprocal. Softmax rows then no longer sum to exactly
                   1 (~1e-3 relative error) -- documented fast-path tradeoff.
    """
    B, N, Din = feat.shape
    H = num_heads
    Dvh = dim_v // H
    inv_norm = 1.0 / (float(dim_qk) ** 0.5)
    compute_dtype = jnp.float32 if precise else jnp.bfloat16

    # Query-tile size: must divide N and respect sublane packing (8 f32 / 16
    # bf16); otherwise fall back to a single full-sequence tile.
    sub = 8 if precise else 16
    tq = q_tile if (q_tile <= N and N % q_tile == 0 and q_tile % sub == 0) else N

    # Head-stacked, lane-dense weights (host-side, once). 1/sqrt(Dqk) is folded
    # into the Q weights/bias so no O(N^2) scale touches the score matrix.
    wq_all = jnp.transpose(params["wq"], (1, 0, 2)).reshape(Din, H * dim_qk) * inv_norm
    bq_all = params["bq"].reshape(1, H * dim_qk) * inv_norm
    wk_all = jnp.transpose(params["wk"], (1, 0, 2)).reshape(Din, H * dim_qk)
    bk_all = params["bk"].reshape(1, H * dim_qk)
    wv_all = jnp.transpose(params["wv"], (1, 0, 2)).reshape(Din, dim_v)
    bv_all = params["bv"].reshape(1, dim_v)
    # K and V fused column-wise -> one projection matmul in the kernel.
    wkv = jnp.concatenate([wk_all, wv_all], axis=1)          # (Din, H*Dqk+dim_v)
    bkv = jnp.concatenate([bk_all, bv_all], axis=1)          # (1,   H*Dqk+dim_v)

    # Cast MXU operands (and the only N-scaled HBM->VMEM DMA) to the compute
    # dtype in the wrapper; biases stay f32 and are added to f32 accumulators.
    x = feat.astype(compute_dtype)
    wq_all = wq_all.astype(compute_dtype)
    wkv = wkv.astype(compute_dtype)
    wf = params["wf"].astype(compute_dtype)                  # (dim_v, dim_v)
    bf = params["bf"].astype(jnp.float32)                    # (1, dim_v)
    bq_all = bq_all.astype(jnp.float32)
    bkv = bkv.astype(jnp.float32)

    kernel = functools.partial(
        mhsa_kernel, num_heads=H, dim_qk=dim_qk, dim_vh=Dvh,
        compute_dtype=compute_dtype, approx_recip=not precise)

    Wq = H * dim_qk
    Wkv = Wq + dim_v

    def call(single_buffer_weights):
        # Weights/biases are grid-invariant; single-buffer them when supported
        # (halves weight VMEM -- matters most under v7x's 64 MiB budget).
        if single_buffer_weights:
            def wspec(shape):
                return pl.BlockSpec(shape, lambda b, qi: (0, 0),
                                    pipeline_mode=pl.Buffered(1))
        else:
            def wspec(shape):
                return pl.BlockSpec(shape, lambda b, qi: (0, 0))

        return pl.pallas_call(
            kernel,
            out_shape=jax.ShapeDtypeStruct((B, N, dim_v), feat.dtype),
            grid=(B, N // tq),
            in_specs=[
                pl.BlockSpec((1, tq, Din), lambda b, qi: (b, qi, 0)),   # queries
                pl.BlockSpec((1, N, Din), lambda b, qi: (b, 0, 0)),     # keys/values
                wspec((Din, Wq)),        # wq_all (scaled)
                wspec((1, Wq)),          # bq_all (scaled)
                wspec((Din, Wkv)),       # wkv = [wk | wv]
                wspec((1, Wkv)),         # bkv
                wspec((dim_v, dim_v)),   # wf
                wspec((1, dim_v)),       # bf
            ],
            out_specs=pl.BlockSpec((1, tq, dim_v), lambda b, qi: (b, qi, 0)),
            scratch_shapes=[pltpu.VMEM((tq, dim_v), jnp.float32)],       # ctx
            compiler_params=pltpu.CompilerParams(
                dimension_semantics=("parallel", "parallel")),
        )(x, x, wq_all, bq_all, wkv, bkv, wf, bf)

    try:
        return call(single_buffer_weights=True)
    except Exception:
        # Fallback for jax versions without BlockSpec(pipeline_mode=Buffered(1)).
        return call(single_buffer_weights=False)


# ----------------------------- reference (JAX) -------------------------------

def reference(feat, params, *, num_heads, dim_qk, dim_v):
    norm = float(dim_qk) ** 0.5
    outs = []
    for h in range(num_heads):
        q = feat @ params["wq"][h] + params["bq"][h]
        k = feat @ params["wk"][h] + params["bk"][h]
        v = feat @ params["wv"][h] + params["bv"][h]
        s = jnp.einsum("bik,bjk->bij", q, k) / norm
        att = jax.nn.softmax(s, axis=2)
        outs.append(jnp.einsum("bij,bjc->bic", att, v))
    cat = jnp.concatenate(outs, axis=-1)
    return cat @ params["wf"] + params["bf"]


# ---------------------------------- main --------------------------------------

def init_params(key, num_heads, dim_in, dim_qk, dim_v):
    Dvh = dim_v // num_heads
    ks = jax.random.split(key, 8)
    scale = 0.1
    return {
        "wq": scale * jax.random.normal(ks[0], (num_heads, dim_in, dim_qk), jnp.float32),
        "bq": scale * jax.random.normal(ks[1], (num_heads, 1, dim_qk), jnp.float32),
        "wk": scale * jax.random.normal(ks[2], (num_heads, dim_in, dim_qk), jnp.float32),
        "bk": scale * jax.random.normal(ks[3], (num_heads, 1, dim_qk), jnp.float32),
        "wv": scale * jax.random.normal(ks[4], (num_heads, dim_in, Dvh), jnp.float32),
        "bv": scale * jax.random.normal(ks[5], (num_heads, 1, Dvh), jnp.float32),
        "wf": scale * jax.random.normal(ks[6], (dim_v, dim_v), jnp.float32),
        "bf": scale * jax.random.normal(ks[7], (1, dim_v), jnp.float32),
    }


if __name__ == "__main__":
    num_heads, dim_in, dim_qk, dim_v = 4, 32, 16, 32
    B, N = 2, 8

    key = jax.random.PRNGKey(0)
    kx, kp, kx2 = jax.random.split(key, 3)
    feat = jax.random.normal(kx, (B, N, dim_in), jnp.float32)
    params = init_params(kp, num_heads, dim_in, dim_qk, dim_v)

    ref = reference(feat, params, num_heads=num_heads, dim_qk=dim_qk, dim_v=dim_v)

    # precise path: f32 MXU operands + exact reciprocal -> tight tolerance
    out_f32 = jax.block_until_ready(
        multihead_self_attention(feat, params, num_heads=num_heads,
                                 dim_qk=dim_qk, dim_v=dim_v, precise=True))
    assert out_f32.shape == (B, N, dim_v)
    assert jnp.allclose(out_f32, ref, atol=1e-4, rtol=1e-4)

    # fast path: bf16 operands (f32 accumulation) + approx reciprocal
    out_bf16 = jax.block_until_ready(
        multihead_self_attention(feat, params, num_heads=num_heads,
                                 dim_qk=dim_qk, dim_v=dim_v, precise=False))
    assert out_bf16.shape == (B, N, dim_v)
    assert jnp.allclose(out_bf16, ref, atol=3e-2, rtol=3e-2)

    # exercise the query-tile grid axis (tq < N) on the precise path
    N2 = 16
    feat2 = jax.random.normal(kx2, (B, N2, dim_in), jnp.float32)
    ref2 = reference(feat2, params, num_heads=num_heads, dim_qk=dim_qk, dim_v=dim_v)
    out_tiled = jax.block_until_ready(
        multihead_self_attention(feat2, params, num_heads=num_heads,
                                 dim_qk=dim_qk, dim_v=dim_v,
                                 precise=True, q_tile=8))
    assert out_tiled.shape == (B, N2, dim_v)
    assert jnp.allclose(out_tiled, ref2, atol=1e-4, rtol=1e-4)

    print("KERNEL_OK")
</pallas_src>

<mosaic_0001>
module attributes {stable_mosaic.version = 11 : i64} {
  func.func @mhsa_kernel(%arg0: i32, %arg1: i32, %arg2: memref<1x8x32xf32, #tpu.memory_space<vmem>>, %arg3: memref<1x8x32xf32, #tpu.memory_space<vmem>>, %arg4: memref<32x64xf32, #tpu.memory_space<vmem>>, %arg5: memref<1x64xf32, #tpu.memory_space<vmem>>, %arg6: memref<32x96xf32, #tpu.memory_space<vmem>>, %arg7: memref<1x96xf32, #tpu.memory_space<vmem>>, %arg8: memref<32x32xf32, #tpu.memory_space<vmem>>, %arg9: memref<1x32xf32, #tpu.memory_space<vmem>>, %arg10: memref<1x8x32xf32, #tpu.memory_space<vmem>>, %arg11: memref<8x32xf32, #tpu.memory_space<vmem>>) attributes {dimension_semantics = [#tpu.dimension_semantics<parallel>, #tpu.dimension_semantics<parallel>], iteration_bounds = array<i64: 2, 1>, scalar_prefetch = 0 : i64, scratch_operands = 1 : i64, tpu.core_type = #tpu.core_type<tc>, window_params = [{transform_indices = @transform_0, window_bounds = array<i64: 1, 8, 32>}, {transform_indices = @transform_1, window_bounds = array<i64: 1, 8, 32>}, {pipeline_mode = #tpu.pipeline_mode<synchronous>, transform_indices = @transform_2, window_bounds = array<i64: 32, 64>}, {pipeline_mode = #tpu.pipeline_mode<synchronous>, transform_indices = @transform_3, window_bounds = array<i64: 1, 64>}, {pipeline_mode = #tpu.pipeline_mode<synchronous>, transform_indices = @transform_4, window_bounds = array<i64: 32, 96>}, {pipeline_mode = #tpu.pipeline_mode<synchronous>, transform_indices = @transform_5, window_bounds = array<i64: 1, 96>}, {pipeline_mode = #tpu.pipeline_mode<synchronous>, transform_indices = @transform_6, window_bounds = array<i64: 32, 32>}, {pipeline_mode = #tpu.pipeline_mode<synchronous>, transform_indices = @transform_7, window_bounds = array<i64: 1, 32>}, {transform_indices = @transform_8, window_bounds = array<i64: 1, 8, 32>}]} {
    %c0 = arith.constant 0 : index
    %c0_0 = arith.constant 0 : index
    %c0_1 = arith.constant 0 : index
    %0 = vector.load %arg2[%c0, %c0_0, %c0_1] : memref<1x8x32xf32, #tpu.memory_space<vmem>>, vector<1x8x32xf32>
    %1 = vector.shape_cast %0 : vector<1x8x32xf32> to vector<8x32xf32>
    %c0_2 = arith.constant 0 : index
    %c0_3 = arith.constant 0 : index
    %c0_4 = arith.constant 0 : index
    %2 = vector.load %arg3[%c0_2, %c0_3, %c0_4] : memref<1x8x32xf32, #tpu.memory_space<vmem>>, vector<1x8x32xf32>
    %3 = vector.shape_cast %2 : vector<1x8x32xf32> to vector<8x32xf32>
    %c0_5 = arith.constant 0 : index
    %c0_6 = arith.constant 0 : index
    %4 = vector.load %arg4[%c0_5, %c0_6] : memref<32x64xf32, #tpu.memory_space<vmem>>, vector<32x64xf32>
    %cst = arith.constant dense<0.000000e+00> : vector<8x64xf32>
    %5 = tpu.matmul %1, %4, %cst {dimension_numbers = #tpu.dot_dimension_numbers<[1], [0], [0], [1], [0, 0, 1, 1], [], []>} : vector<8x32xf32>, vector<32x64xf32>, vector<8x64xf32> -> vector<8x64xf32>
    %c0_7 = arith.constant 0 : index
    %c0_8 = arith.constant 0 : index
    %6 = vector.load %arg5[%c0_7, %c0_8] : memref<1x64xf32, #tpu.memory_space<vmem>>, vector<1x64xf32>
    %7 = vector.broadcast %6 : vector<1x64xf32> to vector<8x64xf32>
    %8 = arith.addf %5, %7 : vector<8x64xf32>
    %c0_9 = arith.constant 0 : index
    %c0_10 = arith.constant 0 : index
    %9 = vector.load %arg6[%c0_9, %c0_10] : memref<32x96xf32, #tpu.memory_space<vmem>>, vector<32x96xf32>
    %cst_11 = arith.constant dense<0.000000e+00> : vector<8x96xf32>
    %10 = tpu.matmul %3, %9, %cst_11 {dimension_numbers = #tpu.dot_dimension_numbers<[1], [0], [0], [1], [0, 0, 1, 1], [], []>} : vector<8x32xf32>, vector<32x96xf32>, vector<8x96xf32> -> vector<8x96xf32>
    %c0_12 = arith.constant 0 : index
    %c0_13 = arith.constant 0 : index
    %11 = vector.load %arg7[%c0_12, %c0_13] : memref<1x96xf32, #tpu.memory_space<vmem>>, vector<1x96xf32>
    %12 = vector.broadcast %11 : vector<1x96xf32> to vector<8x96xf32>
    %13 = arith.addf %10, %12 : vector<8x96xf32>
    %14 = vector.extract_strided_slice %13 {offsets = [0, 0], sizes = [8, 64], strides = [1, 1]} : vector<8x96xf32> to vector<8x64xf32>
    %15 = vector.extract_strided_slice %13 {offsets = [0, 64], sizes = [8, 32], strides = [1, 1]} : vector<8x96xf32> to vector<8x32xf32>
    %16 = vector.extract_strided_slice %8 {offsets = [0, 0], sizes = [8, 16], strides = [1, 1]} : vector<8x64xf32> to vector<8x16xf32>
    %17 = vector.extract_strided_slice %14 {offsets = [0, 0], sizes = [8, 16], strides = [1, 1]} : vector<8x64xf32> to vector<8x16xf32>
    %18 = vector.extract_strided_slice %15 {offsets = [0, 0], sizes = [8, 8], strides = [1, 1]} : vector<8x32xf32> to vector<8x8xf32>
    %cst_14 = arith.constant dense<0.000000e+00> : vector<8x8xf32>
    %19 = tpu.matmul %16, %17, %cst_14 {dimension_numbers = #tpu.dot_dimension_numbers<[1], [1], [0], [0], [0, 0, 1, 0], [], []>} : vector<8x16xf32>, vector<8x16xf32>, vector<8x8xf32> -> vector<8x8xf32>
    %cst_15 = arith.constant dense<0xFF800000> : vector<8xf32>
    %20 = vector.multi_reduction <maximumf>, %19, %cst_15 [1] : vector<8x8xf32> to vector<8xf32>
    %21 = vector.shape_cast %20 : vector<8xf32> to vector<8x1xf32>
    %22 = vector.broadcast %21 : vector<8x1xf32> to vector<8x8xf32>
    %23 = arith.subf %19, %22 : vector<8x8xf32>
    %24 = math.exp %23 : vector<8x8xf32>
    %cst_16 = arith.constant dense<0.000000e+00> : vector<8xf32>
    %25 = vector.multi_reduction <add>, %24, %cst_16 [1] : vector<8x8xf32> to vector<8xf32>
    %26 = vector.shape_cast %25 : vector<8xf32> to vector<8x1xf32>
    %27 = tpu.reciprocal %26 : vector<8x1xf32> -> vector<8x1xf32>
    %28 = vector.broadcast %27 : vector<8x1xf32> to vector<8x8xf32>
    %29 = arith.mulf %24, %28 : vector<8x8xf32>
    %cst_17 = arith.constant dense<0.000000e+00> : vector<8x8xf32>
    %30 = tpu.matmul %29, %18, %cst_17 {dimension_numbers = #tpu.dot_dimension_numbers<[1], [0], [0], [1], [0, 0, 1, 1], [], []>} : vector<8x8xf32>, vector<8x8xf32>, vector<8x8xf32> -> vector<8x8xf32>
    %c0_18 = arith.constant 0 : index
    %c0_19 = arith.constant 0 : index
    %31 = vector.load %arg11[%c0_18, %c0_19] : memref<8x32xf32, #tpu.memory_space<vmem>>, vector<8x8xf32>
    tpu.vector_store %arg11[%c0_18, %c0_19], %30 {strides = array<i32>} : memref<8x32xf32, #tpu.memory_space<vmem>>, vector<8x8xf32>,
    %32 = vector.extract_strided_slice %8 {offsets = [0, 16], sizes = [8, 16], strides = [1, 1]} : vector<8x64xf32> to vector<8x16xf32>
    %33 = vector.extract_strided_slice %14 {offsets = [0, 16], sizes = [8, 16], strides = [1, 1]} : vector<8x64xf32> to vector<8x16xf32>
    %34 = vector.extract_strided_slice %15 {offsets = [0, 8], sizes = [8, 8], strides = [1, 1]} : vector<8x32xf32> to vector<8x8xf32>
    %cst_20 = arith.constant dense<0.000000e+00> : vector<8x8xf32>
    %35 = tpu.matmul %32, %33, %cst_20 {dimension_numbers = #tpu.dot_dimension_numbers<[1], [1], [0], [0], [0, 0, 1, 0], [], []>} : vector<8x16xf32>, vector<8x16xf32>, vector<8x8xf32> -> vector<8x8xf32>
    %cst_21 = arith.constant dense<0xFF800000> : vector<8xf32>
    %36 = vector.multi_reduction <maximumf>, %35, %cst_21 [1] : vector<8x8xf32> to vector<8xf32>
    %37 = vector.shape_cast %36 : vector<8xf32> to vector<8x1xf32>
    %38 = vector.broadcast %37 : vector<8x1xf32> to vector<8x8xf32>
    %39 = arith.subf %35, %38 : vector<8x8xf32>
    %40 = math.exp %39 : vector<8x8xf32>
    %cst_22 = arith.constant dense<0.000000e+00> : vector<8xf32>
    %41 = vector.multi_reduction <add>, %40, %cst_22 [1] : vector<8x8xf32> to vector<8xf32>
    %42 = vector.shape_cast %41 : vector<8xf32> to vector<8x1xf32>
    %43 = tpu.reciprocal %42 : vector<8x1xf32> -> vector<8x1xf32>
    %44 = vector.broadcast %43 : vector<8x1xf32> to vector<8x8xf32>
    %45 = arith.mulf %40, %44 : vector<8x8xf32>
    %cst_23 = arith.constant dense<0.000000e+00> : vector<8x8xf32>
    %46 = tpu.matmul %45, %34, %cst_23 {dimension_numbers = #tpu.dot_dimension_numbers<[1], [0], [0], [1], [0, 0, 1, 1], [], []>} : vector<8x8xf32>, vector<8x8xf32>, vector<8x8xf32> -> vector<8x8xf32>
    %c0_24 = arith.constant 0 : index
    %c8 = arith.constant 8 : index
    %47 = vector.load %arg11[%c0_24, %c8] : memref<8x32xf32, #tpu.memory_space<vmem>>, vector<8x8xf32>
    tpu.vector_store %arg11[%c0_24, %c8], %46 {strides = array<i32>} : memref<8x32xf32, #tpu.memory_space<vmem>>, vector<8x8xf32>,
    %48 = vector.extract_strided_slice %8 {offsets = [0, 32], sizes = [8, 16], strides = [1, 1]} : vector<8x64xf32> to vector<8x16xf32>
    %49 = vector.extract_strided_slice %14 {offsets = [0, 32], sizes = [8, 16], strides = [1, 1]} : vector<8x64xf32> to vector<8x16xf32>
    %50 = vector.extract_strided_slice %15 {offsets = [0, 16], sizes = [8, 8], strides = [1, 1]} : vector<8x32xf32> to vector<8x8xf32>
    %cst_25 = arith.constant dense<0.000000e+00> : vector<8x8xf32>
    %51 = tpu.matmul %48, %49, %cst_25 {dimension_numbers = #tpu.dot_dimension_numbers<[1], [1], [0], [0], [0, 0, 1, 0], [], []>} : vector<8x16xf32>, vector<8x16xf32>, vector<8x8xf32> -> vector<8x8xf32>
    %cst_26 = arith.constant dense<0xFF800000> : vector<8xf32>
    %52 = vector.multi_reduction <maximumf>, %51, %cst_26 [1] : vector<8x8xf32> to vector<8xf32>
    %53 = vector.shape_cast %52 : vector<8xf32> to vector<8x1xf32>
    %54 = vector.broadcast %53 : vector<8x1xf32> to vector<8x8xf32>
    %55 = arith.subf %51, %54 : vector<8x8xf32>
    %56 = math.exp %55 : vector<8x8xf32>
    %cst_27 = arith.constant dense<0.000000e+00> : vector<8xf32>
    %57 = vector.multi_reduction <add>, %56, %cst_27 [1] : vector<8x8xf32> to vector<8xf32>
    %58 = vector.shape_cast %57 : vector<8xf32> to vector<8x1xf32>
    %59 = tpu.reciprocal %58 : vector<8x1xf32> -> vector<8x1xf32>
    %60 = vector.broadcast %59 : vector<8x1xf32> to vector<8x8xf32>
    %61 = arith.mulf %56, %60 : vector<8x8xf32>
    %cst_28 = arith.constant dense<0.000000e+00> : vector<8x8xf32>
    %62 = tpu.matmul %61, %50, %cst_28 {dimension_numbers = #tpu.dot_dimension_numbers<[1], [0], [0], [1], [0, 0, 1, 1], [], []>} : vector<8x8xf32>, vector<8x8xf32>, vector<8x8xf32> -> vector<8x8xf32>
    %c0_29 = arith.constant 0 : index
    %c16 = arith.constant 16 : index
    %63 = vector.load %arg11[%c0_29, %c16] : memref<8x32xf32, #tpu.memory_space<vmem>>, vector<8x8xf32>
    tpu.vector_store %arg11[%c0_29, %c16], %62 {strides = array<i32>} : memref<8x32xf32, #tpu.memory_space<vmem>>, vector<8x8xf32>,
    %64 = vector.extract_strided_slice %8 {offsets = [0, 48], sizes = [8, 16], strides = [1, 1]} : vector<8x64xf32> to vector<8x16xf32>
    %65 = vector.extract_strided_slice %14 {offsets = [0, 48], sizes = [8, 16], strides = [1, 1]} : vector<8x64xf32> to vector<8x16xf32>
    %66 = vector.extract_strided_slice %15 {offsets = [0, 24], sizes = [8, 8], strides = [1, 1]} : vector<8x32xf32> to vector<8x8xf32>
    %cst_30 = arith.constant dense<0.000000e+00> : vector<8x8xf32>
    %67 = tpu.matmul %64, %65, %cst_30 {dimension_numbers = #tpu.dot_dimension_numbers<[1], [1], [0], [0], [0, 0, 1, 0], [], []>} : vector<8x16xf32>, vector<8x16xf32>, vector<8x8xf32> -> vector<8x8xf32>
    %cst_31 = arith.constant dense<0xFF800000> : vector<8xf32>
    %68 = vector.multi_reduction <maximumf>, %67, %cst_31 [1] : vector<8x8xf32> to vector<8xf32>
    %69 = vector.shape_cast %68 : vector<8xf32> to vector<8x1xf32>
    %70 = vector.broadcast %69 : vector<8x1xf32> to vector<8x8xf32>
    %71 = arith.subf %67, %70 : vector<8x8xf32>
    %72 = math.exp %71 : vector<8x8xf32>
    %cst_32 = arith.constant dense<0.000000e+00> : vector<8xf32>
    %73 = vector.multi_reduction <add>, %72, %cst_32 [1] : vector<8x8xf32> to vector<8xf32>
    %74 = vector.shape_cast %73 : vector<8xf32> to vector<8x1xf32>
    %75 = tpu.reciprocal %74 : vector<8x1xf32> -> vector<8x1xf32>
    %76 = vector.broadcast %75 : vector<8x1xf32> to vector<8x8xf32>
    %77 = arith.mulf %72, %76 : vector<8x8xf32>
    %cst_33 = arith.constant dense<0.000000e+00> : vector<8x8xf32>
    %78 = tpu.matmul %77, %66, %cst_33 {dimension_numbers = #tpu.dot_dimension_numbers<[1], [0], [0], [1], [0, 0, 1, 1], [], []>} : vector<8x8xf32>, vector<8x8xf32>, vector<8x8xf32> -> vector<8x8xf32>
    %c0_34 = arith.constant 0 : index
    %c24 = arith.constant 24 : index
    %79 = vector.load %arg11[%c0_34, %c24] : memref<8x32xf32, #tpu.memory_space<vmem>>, vector<8x8xf32>
    tpu.vector_store %arg11[%c0_34, %c24], %78 {strides = array<i32>} : memref<8x32xf32, #tpu.memory_space<vmem>>, vector<8x8xf32>,
    %c0_35 = arith.constant 0 : index
    %c0_36 = arith.constant 0 : index
    %80 = vector.load %arg11[%c0_35, %c0_36] : memref<8x32xf32, #tpu.memory_space<vmem>>, vector<8x32xf32>
    %c0_37 = arith.constant 0 : index
    %c0_38 = arith.constant 0 : index
    %81 = vector.load %arg8[%c0_37, %c0_38] : memref<32x32xf32, #tpu.memory_space<vmem>>, vector<32x32xf32>
    %cst_39 = arith.constant dense<0.000000e+00> : vector<8x32xf32>
    %82 = tpu.matmul %80, %81, %cst_39 {dimension_numbers = #tpu.dot_dimension_numbers<[1], [0], [0], [1], [0, 0, 1, 1], [], []>} : vector<8x32xf32>, vector<32x32xf32>, vector<8x32xf32> -> vector<8x32xf32>
    %c0_40 = arith.constant 0 : index
    %c0_41 = arith.constant 0 : index
    %83 = vector.load %arg9[%c0_40, %c0_41] : memref<1x32xf32, #tpu.memory_space<vmem>>, vector<1x32xf32>
    %84 = vector.broadcast %83 : vector<1x32xf32> to vector<8x32xf32>
    %85 = arith.addf %82, %84 : vector<8x32xf32>
    %c0_42 = arith.constant 0 : index
    %c0_43 = arith.constant 0 : index
    %c0_44 = arith.constant 0 : index
    %86 = vector.load %arg10[%c0_42, %c0_43, %c0_44] : memref<1x8x32xf32, #tpu.memory_space<vmem>>, vector<1x8x32xf32>
    %87 = vector.shape_cast %86 : vector<1x8x32xf32> to vector<8x32xf32>
    %88 = vector.shape_cast %85 : vector<8x32xf32> to vector<1x8x32xf32>
    tpu.vector_store %arg10[%c0_42, %c0_43, %c0_44], %88 {strides = array<i32>} : memref<1x8x32xf32, #tpu.memory_space<vmem>>, vector<1x8x32xf32>,
    return
  }
  func.func @transform_0(%arg0: i32, %arg1: i32) -> (i32, i32, i32) {
    %c0_i32 = arith.constant 0 : i32
    %c0_i32_0 = arith.constant 0 : i32
    return %arg0, %arg1, %c0_i32 : i32, i32, i32
  }
  func.func @transform_1(%arg0: i32, %arg1: i32) -> (i32, i32, i32) {
    %c0_i32 = arith.constant 0 : i32
    %c0_i32_0 = arith.constant 0 : i32
    %c0_i32_1 = arith.constant 0 : i32
    return %arg0, %c0_i32, %c0_i32_0 : i32, i32, i32
  }
  func.func @transform_2(%arg0: i32, %arg1: i32) -> (i32, i32) {
    %c0_i32 = arith.constant 0 : i32
    %c0_i32_0 = arith.constant 0 : i32
    %c0_i32_1 = arith.constant 0 : i32
    return %c0_i32, %c0_i32_0 : i32, i32
  }
  func.func @transform_3(%arg0: i32, %arg1: i32) -> (i32, i32) {
    %c0_i32 = arith.constant 0 : i32
    %c0_i32_0 = arith.constant 0 : i32
    %c0_i32_1 = arith.constant 0 : i32
    return %c0_i32, %c0_i32_0 : i32, i32
  }
  func.func @transform_4(%arg0: i32, %arg1: i32) -> (i32, i32) {
    %c0_i32 = arith.constant 0 : i32
    %c0_i32_0 = arith.constant 0 : i32
    %c0_i32_1 = arith.constant 0 : i32
    return %c0_i32, %c0_i32_0 : i32, i32
  }
  func.func @transform_5(%arg0: i32, %arg1: i32) -> (i32, i32) {
    %c0_i32 = arith.constant 0 : i32
    %c0_i32_0 = arith.constant 0 : i32
    %c0_i32_1 = arith.constant 0 : i32
    return %c0_i32, %c0_i32_0 : i32, i32
  }
  func.func @transform_6(%arg0: i32, %arg1: i32) -> (i32, i32) {
    %c0_i32 = arith.constant 0 : i32
    %c0_i32_0 = arith.constant 0 : i32
    %c0_i32_1 = arith.constant 0 : i32
    return %c0_i32, %c0_i32_0 : i32, i32
  }
  func.func @transform_7(%arg0: i32, %arg1: i32) -> (i32, i32) {
    %c0_i32 = arith.constant 0 : i32
    %c0_i32_0 = arith.constant 0 : i32
    %c0_i32_1 = arith.constant 0 : i32
    return %c0_i32, %c0_i32_0 : i32, i32
  }
  func.func @transform_8(%arg0: i32, %arg1: i32) -> (i32, i32, i32) {
    %c0_i32 = arith.constant 0 : i32
    %c0_i32_0 = arith.constant 0 : i32
    return %arg0, %arg1, %c0_i32 : i32, i32, i32
  }
}

module attributes {stable_mosaic.version = 11 : i64} {
  func.func @mhsa_kernel(%arg0: i32, %arg1: i32, %arg2: memref<1x8x32xf32, #tpu.memory_space<vmem>>, %arg3: memref<1x8x32xf32, #tpu.memory_space<vmem>>, %arg4: memref<32x64xf32, #tpu.memory_space<vmem>>, %arg5: memref<1x64xf32, #tpu.memory_space<vmem>>, %arg6: memref<32x96xf32, #tpu.memory_space<vmem>>, %arg7: memref<1x96xf32, #tpu.memory_space<vmem>>, %arg8: memref<32x32xf32, #tpu.memory_space<vmem>>, %arg9: memref<1x32xf32, #tpu.memory_space<vmem>>, %arg10: memref<1x8x32xf32, #tpu.memory_space<vmem>>, %arg11: memref<8x32xf32, #tpu.memory_space<vmem>>) attributes {dimension_semantics = [#tpu.dimension_semantics<parallel>, #tpu.dimension_semantics<parallel>], iteration_bounds = array<i64: 2, 1>, scalar_prefetch = 0 : i64, scratch_operands = 1 : i64, tpu.core_type = #tpu.core_type<tc>, window_params = [{transform_indices = @transform_0, window_bounds = array<i64: 1, 8, 32>}, {transform_indices = @transform_1, window_bounds = array<i64: 1, 8, 32>}, {pipeline_mode = #tpu.pipeline_mode<synchronous>, transform_indices = @transform_2, window_bounds = array<i64: 32, 64>}, {pipeline_mode = #tpu.pipeline_mode<synchronous>, transform_indices = @transform_3, window_bounds = array<i64: 1, 64>}, {pipeline_mode = #tpu.pipeline_mode<synchronous>, transform_indices = @transform_4, window_bounds = array<i64: 32, 96>}, {pipeline_mode = #tpu.pipeline_mode<synchronous>, transform_indices = @transform_5, window_bounds = array<i64: 1, 96>}, {pipeline_mode = #tpu.pipeline_mode<synchronous>, transform_indices = @transform_6, window_bounds = array<i64: 32, 32>}, {pipeline_mode = #tpu.pipeline_mode<synchronous>, transform_indices = @transform_7, window_bounds = array<i64: 1, 32>}, {transform_indices = @transform_8, window_bounds = array<i64: 1, 8, 32>}]} {
    %c0 = arith.constant 0 : index
    %c0_0 = arith.constant 0 : index
    %c0_1 = arith.constant 0 : index
    %0 = vector.load %arg2[%c0, %c0_0, %c0_1] : memref<1x8x32xf32, #tpu.memory_space<vmem>>, vector<1x8x32xf32>
    %1 = vector.shape_cast %0 : vector<1x8x32xf32> to vector<8x32xf32>
    %c0_2 = arith.constant 0 : index
    %c0_3 = arith.constant 0 : index
    %c0_4 = arith.constant 0 : index
    %2 = vector.load %arg3[%c0_2, %c0_3, %c0_4] : memref<1x8x32xf32, #tpu.memory_space<vmem>>, vector<1x8x32xf32>
    %3 = vector.shape_cast %2 : vector<1x8x32xf32> to vector<8x32xf32>
    %c0_5 = arith.constant 0 : index
    %c0_6 = arith.constant 0 : index
    %4 = vector.load %arg4[%c0_5, %c0_6] : memref<32x64xf32, #tpu.memory_space<vmem>>, vector<32x64xf32>
    %cst = arith.constant dense<0.000000e+00> : vector<8x64xf32>
    %5 = tpu.matmul %1, %4, %cst {dimension_numbers = #tpu.dot_dimension_numbers<[1], [0], [0], [1], [0, 0, 1, 1], [], []>} : vector<8x32xf32>, vector<32x64xf32>, vector<8x64xf32> -> vector<8x64xf32>
    %c0_7 = arith.constant 0 : index
    %c0_8 = arith.constant 0 : index
    %6 = vector.load %arg5[%c0_7, %c0_8] : memref<1x64xf32, #tpu.memory_space<vmem>>, vector<1x64xf32>
    %7 = vector.broadcast %6 : vector<1x64xf32> to vector<8x64xf32>
    %8 = arith.addf %5, %7 : vector<8x64xf32>
    %c0_9 = arith.constant 0 : index
    %c0_10 = arith.constant 0 : index
    %9 = vector.load %arg6[%c0_9, %c0_10] : memref<32x96xf32, #tpu.memory_space<vmem>>, vector<32x96xf32>
    %cst_11 = arith.constant dense<0.000000e+00> : vector<8x96xf32>
    %10 = tpu.matmul %3, %9, %cst_11 {dimension_numbers = #tpu.dot_dimension_numbers<[1], [0], [0], [1], [0, 0, 1, 1], [], []>} : vector<8x32xf32>, vector<32x96xf32>, vector<8x96xf32> -> vector<8x96xf32>
    %c0_12 = arith.constant 0 : index
    %c0_13 = arith.constant 0 : index
    %11 = vector.load %arg7[%c0_12, %c0_13] : memref<1x96xf32, #tpu.memory_space<vmem>>, vector<1x96xf32>
    %12 = vector.broadcast %11 : vector<1x96xf32> to vector<8x96xf32>
    %13 = arith.addf %10, %12 : vector<8x96xf32>
    %14 = vector.extract_strided_slice %13 {offsets = [0, 0], sizes = [8, 64], strides = [1, 1]} : vector<8x96xf32> to vector<8x64xf32>
    %15 = vector.extract_strided_slice %13 {offsets = [0, 64], sizes = [8, 32], strides = [1, 1]} : vector<8x96xf32> to vector<8x32xf32>
    %16 = vector.extract_strided_slice %8 {offsets = [0, 0], sizes = [8, 16], strides = [1, 1]} : vector<8x64xf32> to vector<8x16xf32>
    %17 = vector.extract_strided_slice %14 {offsets = [0, 0], sizes = [8, 16], strides = [1, 1]} : vector<8x64xf32> to vector<8x16xf32>
    %18 = vector.extract_strided_slice %15 {offsets = [0, 0], sizes = [8, 8], strides = [1, 1]} : vector<8x32xf32> to vector<8x8xf32>
    %cst_14 = arith.constant dense<0.000000e+00> : vector<8x8xf32>
    %19 = tpu.matmul %16, %17, %cst_14 {dimension_numbers = #tpu.dot_dimension_numbers<[1], [1], [0], [0], [0, 0, 1, 0], [], []>} : vector<8x16xf32>, vector<8x16xf32>, vector<8x8xf32> -> vector<8x8xf32>
    %cst_15 = arith.constant dense<0xFF800000> : vector<8xf32>
    %20 = vector.multi_reduction <maximumf>, %19, %cst_15 [1] : vector<8x8xf32> to vector<8xf32>
    %21 = vector.shape_cast %20 : vector<8xf32> to vector<8x1xf32>
    %22 = vector.broadcast %21 : vector<8x1xf32> to vector<8x8xf32>
    %23 = arith.subf %19, %22 : vector<8x8xf32>
    %24 = math.exp %23 : vector<8x8xf32>
    %cst_16 = arith.constant dense<0.000000e+00> : vector<8xf32>
    %25 = vector.multi_reduction <add>, %24, %cst_16 [1] : vector<8x8xf32> to vector<8xf32>
    %26 = vector.shape_cast %25 : vector<8xf32> to vector<8x1xf32>
    %27 = tpu.reciprocal %26 : vector<8x1xf32> -> vector<8x1xf32>
    %28 = vector.broadcast %27 : vector<8x1xf32> to vector<8x8xf32>
    %29 = arith.mulf %24, %28 : vector<8x8xf32>
    %cst_17 = arith.constant dense<0.000000e+00> : vector<8x8xf32>
    %30 = tpu.matmul %29, %18, %cst_17 {dimension_numbers = #tpu.dot_dimension_numbers<[1], [0], [0], [1], [0, 0, 1, 1], [], []>} : vector<8x8xf32>, vector<8x8xf32>, vector<8x8xf32> -> vector<8x8xf32>
    %c0_18 = arith.constant 0 : index
    %c0_19 = arith.constant 0 : index
    %31 = vector.load %arg11[%c0_18, %c0_19] : memref<8x32xf32, #tpu.memory_space<vmem>>, vector<8x8xf32>
    tpu.vector_store %arg11[%c0_18, %c0_19], %30 {strides = array<i32>} : memref<8x32xf32, #tpu.memory_space<vmem>>, vector<8x8xf32>,
    %32 = vector.extract_strided_slice %8 {offsets = [0, 16], sizes = [8, 16], strides = [1, 1]} : vector<8x64xf32> to vector<8x16xf32>
    %33 = vector.extract_strided_slice %14 {offsets = [0, 16], sizes = [8, 16], strides = [1, 1]} : vector<8x64xf32> to vector<8x16xf32>
    %34 = vector.extract_strided_slice %15 {offsets = [0, 8], sizes = [8, 8], strides = [1, 1]} : vector<8x32xf32> to vector<8x8xf32>
    %cst_20 = arith.constant dense<0.000000e+00> : vector<8x8xf32>
    %35 = tpu.matmul %32, %33, %cst_20 {dimension_numbers = #tpu.dot_dimension_numbers<[1], [1], [0], [0], [0, 0, 1, 0], [], []>} : vector<8x16xf32>, vector<8x16xf32>, vector<8x8xf32> -> vector<8x8xf32>
    %cst_21 = arith.constant dense<0xFF800000> : vector<8xf32>
    %36 = vector.multi_reduction <maximumf>, %35, %cst_21 [1] : vector<8x8xf32> to vector<8xf32>
    %37 = vector.shape_cast %36 : vector<8xf32> to vector<8x1xf32>
    %38 = vector.broadcast %37 : vector<8x1xf32> to vector<8x8xf32>
    %39 = arith.subf %35, %38 : vector<8x8xf32>
    %40 = math.exp %39 : vector<8x8xf32>
    %cst_22 = arith.constant dense<0.000000e+00> : vector<8xf32>
    %41 = vector.multi_reduction <add>, %40, %cst_22 [1] : vector<8x8xf32> to vector<8xf32>
    %42 = vector.shape_cast %41 : vector<8xf32> to vector<8x1xf32>
    %43 = tpu.reciprocal %42 : vector<8x1xf32> -> vector<8x1xf32>
    %44 = vector.broadcast %43 : vector<8x1xf32> to vector<8x8xf32>
    %45 = arith.mulf %40, %44 : vector<8x8xf32>
    %cst_23 = arith.constant dense<0.000000e+00> : vector<8x8xf32>
    %46 = tpu.matmul %45, %34, %cst_23 {dimension_numbers = #tpu.dot_dimension_numbers<[1], [0], [0], [1], [0, 0, 1, 1], [], []>} : vector<8x8xf32>, vector<8x8xf32>, vector<8x8xf32> -> vector<8x8xf32>
    %c0_24 = arith.constant 0 : index
    %c8 = arith.constant 8 : index
    %47 = vector.load %arg11[%c0_24, %c8] : memref<8x32xf32, #tpu.memory_space<vmem>>, vector<8x8xf32>
    tpu.vector_store %arg11[%c0_24, %c8], %46 {strides = array<i32>} : memref<8x32xf32, #tpu.memory_space<vmem>>, vector<8x8xf32>,
    %48 = vector.extract_strided_slice %8 {offsets = [0, 32], sizes = [8, 16], strides = [1, 1]} : vector<8x64xf32> to vector<8x16xf32>
    %49 = vector.extract_strided_slice %14 {offsets = [0, 32], sizes = [8, 16], strides = [1, 1]} : vector<8x64xf32> to vector<8x16xf32>
    %50 = vector.extract_strided_slice %15 {offsets = [0, 16], sizes = [8, 8], strides = [1, 1]} : vector<8x32xf32> to vector<8x8xf32>
    %cst_25 = arith.constant dense<0.000000e+00> : vector<8x8xf32>
    %51 = tpu.matmul %48, %49, %cst_25 {dimension_numbers = #tpu.dot_dimension_numbers<[1], [1], [0], [0], [0, 0, 1, 0], [], []>} : vector<8x16xf32>, vector<8x16xf32>, vector<8x8xf32> -> vector<8x8xf32>
    %cst_26 = arith.constant dense<0xFF800000> : vector<8xf32>
    %52 = vector.multi_reduction <maximumf>, %51, %cst_26 [1] : vector<8x8xf32> to vector<8xf32>
    %53 = vector.shape_cast %52 : vector<8xf32> to vector<8x1xf32>
    %54 = vector.broadcast %53 : vector<8x1xf32> to vector<8x8xf32>
    %55 = arith.subf %51, %54 : vector<8x8xf32>
    %56 = math.exp %55 : vector<8x8xf32>
    %cst_27 = arith.constant dense<0.000000e+00> : vector<8xf32>
    %57 = vector.multi_reduction <add>, %56, %cst_27 [1] : vector<8x8xf32> to vector<8xf32>
    %58 = vector.shape_cast %57 : vector<8xf32> to vector<8x1xf32>
    %59 = tpu.reciprocal %58 : vector<8x1xf32> -> vector<8x1xf32>
    %60 = vector.broadcast %59 : vector<8x1xf32> to vector<8x8xf32>
    %61 = arith.mulf %56, %60 : vector<8x8xf32>
    %cst_28 = arith.constant dense<0.000000e+00> : vector<8x8xf32>
    %62 = tpu.matmul %61, %50, %cst_28 {dimension_numbers = #tpu.dot_dimension_numbers<[1], [0], [0], [1], [0, 0, 1, 1], [], []>} : vector<8x8xf32>, vector<8x8xf32>, vector<8x8xf32> -> vector<8x8xf32>
    %c0_29 = arith.constant 0 : index
    %c16 = arith.constant 16 : index
    %63 = vector.load %arg11[%c0_29, %c16] : memref<8x32xf32, #tpu.memory_space<vmem>>, vector<8x8xf32>
    tpu.vector_store %arg11[%c0_29, %c16], %62 {strides = array<i32>} : memref<8x32xf32, #tpu.memory_space<vmem>>, vector<8x8xf32>,
    %64 = vector.extract_strided_slice %8 {offsets = [0, 48], sizes = [8, 16], strides = [1, 1]} : vector<8x64xf32> to vector<8x16xf32>
    %65 = vector.extract_strided_slice %14 {offsets = [0, 48], sizes = [8, 16], strides = [1, 1]} : vector<8x64xf32> to vector<8x16xf32>
    %66 = vector.extract_strided_slice %15 {offsets = [0, 24], sizes = [8, 8], strides = [1, 1]} : vector<8x32xf32> to vector<8x8xf32>
    %cst_30 = arith.constant dense<0.000000e+00> : vector<8x8xf32>
    %67 = tpu.matmul %64, %65, %cst_30 {dimension_numbers = #tpu.dot_dimension_numbers<[1], [1], [0], [0], [0, 0, 1, 0], [], []>} : vector<8x16xf32>, vector<8x16xf32>, vector<8x8xf32> -> vector<8x8xf32>
    %cst_31 = arith.constant dense<0xFF800000> : vector<8xf32>
    %68 = vector.multi_reduction <maximumf>, %67, %cst_31 [1] : vector<8x8xf32> to vector<8xf32>
    %69 = vector.shape_cast %68 : vector<8xf32> to vector<8x1xf32>
    %70 = vector.broadcast %69 : vector<8x1xf32> to vector<8x8xf32>
    %71 = arith.subf %67, %70 : vector<8x8xf32>
    %72 = math.exp %71 : vector<8x8xf32>
    %cst_32 = arith.constant dense<0.000000e+00> : vector<8xf32>
    %73 = vector.multi_reduction <add>, %72, %cst_32 [1] : vector<8x8xf32> to vector<8xf32>
    %74 = vector.shape_cast %73 : vector<8xf32> to vector<8x1xf32>
    %75 = tpu.reciprocal %74 : vector<8x1xf32> -> vector<8x1xf32>
    %76 = vector.broadcast %75 : vector<8x1xf32> to vector<8x8xf32>
    %77 = arith.mulf %72, %76 : vector<8x8xf32>
    %cst_33 = arith.constant dense<0.000000e+00> : vector<8x8xf32>
    %78 = tpu.matmul %77, %66, %cst_33 {dimension_numbers = #tpu.dot_dimension_numbers<[1], [0], [0], [1], [0, 0, 1, 1], [], []>} : vector<8x8xf32>, vector<8x8xf32>, vector<8x8xf32> -> vector<8x8xf32>
    %c0_34 = arith.constant 0 : index
    %c24 = arith.constant 24 : index
    %79 = vector.load %arg11[%c0_34, %c24] : memref<8x32xf32, #tpu.memory_space<vmem>>, vector<8x8xf32>
    tpu.vector_store %arg11[%c0_34, %c24], %78 {strides = array<i32>} : memref<8x32xf32, #tpu.memory_space<vmem>>, vector<8x8xf32>,
    %c0_35 = arith.constant 0 : index
    %c0_36 = arith.constant 0 : index
    %80 = vector.load %arg11[%c0_35, %c0_36] : memref<8x32xf32, #tpu.memory_space<vmem>>, vector<8x32xf32>
    %c0_37 = arith.constant 0 : index
    %c0_38 = arith.constant 0 : index
    %81 = vector.load %arg8[%c0_37, %c0_38] : memref<32x32xf32, #tpu.memory_space<vmem>>, vector<32x32xf32>
    %cst_39 = arith.constant dense<0.000000e+00> : vector<8x32xf32>
    %82 = tpu.matmul %80, %81, %cst_39 {dimension_numbers = #tpu.dot_dimension_numbers<[1], [0], [0], [1], [0, 0, 1, 1], [], []>} : vector<8x32xf32>, vector<32x32xf32>, vector<8x32xf32> -> vector<8x32xf32>
    %c0_40 = arith.constant 0 : index
    %c0_41 = arith.constant 0 : index
    %83 = vector.load %arg9[%c0_40, %c0_41] : memref<1x32xf32, #tpu.memory_space<vmem>>, vector<1x32xf32>
    %84 = vector.broadcast %83 : vector<1x32xf32> to vector<8x32xf32>
    %85 = arith.addf %82, %84 : vector<8x32xf32>
    %c0_42 = arith.constant 0 : index
    %c0_43 = arith.constant 0 : index
    %c0_44 = arith.constant 0 : index
    %86 = vector.load %arg10[%c0_42, %c0_43, %c0_44] : memref<1x8x32xf32, #tpu.memory_space<vmem>>, vector<1x8x32xf32>
    %87 = vector.shape_cast %86 : vector<1x8x32xf32> to vector<8x32xf32>
    %88 = vector.shape_cast %85 : vector<8x32xf32> to vector<1x8x32xf32>
    tpu.vector_store %arg10[%c0_42, %c0_43, %c0_44], %88 {strides = array<i32>} : memref<1x8x32xf32, #tpu.memory_space<vmem>>, vector<1x8x32xf32>,
    return
  }
  func.func @transform_0(%arg0: i32, %arg1: i32) -> (i32, i32, i32) {
    %c0_i32 = arith.constant 0 : i32
    %c0_i32_0 = arith.constant 0 : i32
    return %arg0, %arg1, %c0_i32 : i32, i32, i32
  }
  func.func @transform_1(%arg0: i32, %arg1: i32) -> (i32, i32, i32) {
    %c0_i32 = arith.constant 0 : i32
    %c0_i32_0 = arith.constant 0 : i32
    %c0_i32_1 = arith.constant 0 : i32
    return %arg0, %c0_i32, %c0_i32_0 : i32, i32, i32
  }
  func.func @transform_2(%arg0: i32, %arg1: i32) -> (i32, i32) {
    %c0_i32 = arith.constant 0 : i32
    %c0_i32_0 = arith.constant 0 : i32
    %c0_i32_1 = arith.constant 0 : i32
    return %c0_i32, %c0_i32_0 : i32, i32
  }
  func.func @transform_3(%arg0: i32, %arg1: i32) -> (i32, i32) {
    %c0_i32 = arith.constant 0 : i32
    %c0_i32_0 = arith.constant 0 : i32
    %c0_i32_1 = arith.constant 0 : i32
    return %c0_i32, %c0_i32_0 : i32, i32
  }
  func.func @transform_4(%arg0: i32, %arg1: i32) -> (i32, i32) {
    %c0_i32 = arith.constant 0 : i32
    %c0_i32_0 = arith.constant 0 : i32
    %c0_i32_1 = arith.constant 0 : i32
    return %c0_i32, %c0_i32_0 : i32, i32
  }
  func.func @transform_5(%arg0: i32, %arg1: i32) -> (i32, i32) {
    %c0_i32 = arith.constant 0 : i32
    %c0_i32_0 = arith.constant 0 : i32
    %c0_i32_1 = arith.constant 0 : i32
    return %c0_i32, %c0_i32_0 : i32, i32
  }
  func.func @transform_6(%arg0: i32, %arg1: i32) -> (i32, i32) {
    %c0_i32 = arith.constant 0 : i32
    %c0_i32_0 = arith.constant 0 : i32
    %c0_i32_1 = arith.constant 0 : i32
    return %c0_i32, %c0_i32_0 : i32, i32
  }
  func.func @transform_7(%arg0: i32, %arg1: i32) -> (i32, i32) {
    %c0_i32 = arith.constant 0 : i32
    %c0_i32_0 = arith.constant 0 : i32
    %c0_i32_1 = arith.constant 0 : i32
    return %c0_i32, %c0_i32_0 : i32, i32
  }
  func.func @transform_8(%arg0: i32, %arg1: i32) -> (i32, i32, i32) {
    %c0_i32 = arith.constant 0 : i32
    %c0_i32_0 = arith.constant 0 : i32
    return %arg0, %arg1, %c0_i32 : i32, i32, i32
  }
}

</mosaic_0001>

<bundles_post_ra>
// kernel: tpu_custom_call.1
= control target key start
LH: loop header
LB: loop body
LE: loop exit
PB: predicated region body
PF: predicated region fallthrough
CT: control target
= control target key end

     0   :  { %s2502_s0 = inlined_call_operand.hbm [shape: f32[2,8,32], index: 0, kind: input, shape index: {}]   ;;  %s2503_s1 = inlined_call_operand.hbm [shape: f32[2,8,32], index: 1, kind: input, shape index: {}]   ;;  %s2504_s2 = inlined_call_operand.hbm [shape: f32[32,64], index: 2, kind: input, shape index: {}]   ;;  %s2505_s3 = inlined_call_operand.vmem [shape: f32[1,64], index: 3, kind: input, shape index: {}]   ;;  %s2506_s4 = inlined_call_operand.hbm [shape: f32[32,96], index: 4, kind: input, shape index: {}]   ;;  %s2507_s5 = inlined_call_operand.vmem [shape: f32[1,96], index: 5, kind: input, shape index: {}]   ;;  %s2508_s6 = inlined_call_operand.hbm [shape: f32[32,32], index: 6, kind: input, shape index: {}]   ;;  %s2509_s7 = inlined_call_operand.vmem [shape: f32[1,32], index: 7, kind: input, shape index: {}]   ;;  %s2510_s8 = inlined_call_operand.hbm [shape: f32[2,8,32], index: 8, kind: output, shape index: {}]  }
   0x1   :  { %2518 = sst [smem:[#allocation20_spill]] %s2504_s2 }
   0x2   :  { %2519 = sst [smem:[#allocation21_spill]] %s2506_s4 }
   0x3   :  { %2520 = sst [smem:[#allocation22_spill]] %s2508_s6 }
   0x4   :  { %2521 = sst [smem:[#allocation23_spill]] %s2509_s7 }
   0x5   :  { %2522 = sst [smem:[#allocation24_spill]] %s2510_s8 }
   0x6   :  { %13 = vsyncpa [#allocation4], 0 }
   0x7   :  { %15 = vsyncpa [#allocation4 + $0x1], 0 }
   0x8   :  { %16 = vsyncpa [#allocation7], 0 }
   0x9   :  { %18 = vsyncpa [#allocation7 + $0x1], 0 }
   0xa   :  { %19 = vsyncpa [#allocation10], 0 }
   0xb   :  { %20 = vsyncpa [#allocation5], 0 }
   0xc   :  { %22 = vsyncpa [#allocation5 + $0x1], 0  ;;  %s2097_s27 = smov 0   ;;  %s2099_s28 = smov 0  }
   0xd   :  { %s2101_s29 = smov 0   ;;  %s2103_s30 = smov 0  }
   0xe   :  { %s2105_s9 = smov 0   ;;  %s2107_s10 = smov 0  }
   0xf LB: > { %2523 = sst [smem:[#allocation18_spill]] %s2009_s27  ;;  %s2128_s11 = sadd.s32 4294967295, %s2029_s10   ;;  %s2029_s10 = sphi %s2107_s10, %s28_s10   ;;  %s2025_s9 = sphi %s2105_s9, %s2553_s9   ;;  %s2021_s30 = sphi %s2103_s30, %s2552_s30   ;;  %s2017_s29 = sphi %s2101_s29, %s2551_s29   ;;  %s2013_s28 = sphi %s2099_s28, %s2550_s28   ;;  %s2009_s27 = sphi %s2097_s27, %s2549_s27  }
  0x10   : > { %s1501_s12 = sadd.s32 4294967294, %s2029_s10   ;;  %p62_p0 = scmp.ne.s32.totalorder %s2013_s28, %s2009_s27 }
  0x11   : > { %p2511_p1 = scmp.eq.s32.totalorder %s2128_s11, 0  ;;  %p246_p3 = scmp.eq.s32.totalorder %s1501_s12, 1 }
  0x12   : > { %p1502_p5 = scmp.ge.s32.totalorder %s2029_s10, 1  ;;  %p253_p7 = scmp.lt.s32.totalorder %s2029_s10, 3 }
  0x13   : > { %p2137_p4 = por %p2511_p1, %p62_p0  ;;  %p2142_p6 = por %p246_p3, %p62_p0 }
  0x14   : > { %p2147_p8 = pnand %p1502_p5, %p253_p7  ;;  %s2031_s16 = smov [#allocation8]  }
  0x15   : > { %s2524_s13 = scalar_select %p2137_p4, 1, 0 }
  0x16   : > { %s2525_s14 = scalar_select %p2142_p6, 1, 0 }
  0x17   : > { %s2527_s15 = scalar_select %p2147_p8, 1, 0 }
  0x18   : > { %2526 = sst [smem:[#allocation19_spill]] %s2525_s14  ;;  %s265_s17 = sshll.u32 %s2031_s16, 4  ;;  %s2151_s17 = int_to_ptr.vmem [resolvable:$true] %s265_s17 }
  0x19   : > { %p1680_p9 = pneg %p2147_p8  ;;  %s2032_s19 = smov [#allocation9]  }
  0x1a   : > { %s281_s20 = sshll.u32 %s2032_s19, 4  ;;  %s2033_s21 = smov [#allocation11]   ;;  %s2162_s20 = int_to_ptr.vmem [resolvable:$true] %s281_s20 }
  0x1b   : > { %p2158_p11 = pnand %p1680_p9, %p2511_p1  ;;  %s2164_s22 = sshll.u32 %s2033_s21, 4  ;;  %s298_s22 = int_to_ptr.vmem [resolvable:$true] %s2164_s22 }
  0x1c   : > { %s2529_s2 = sld [smem:[#allocation20_spill]] }
  0x1d   : > { %p2174_p13 = pneg %p2158_p11 }
  0x22   : > { %s1791_s25 = scalar_lea.hbm %s2529_s2, 512 }
  0x23   : > { %p1792_p12 = scmp.ne.s32.totalorder %s2529_s2, %s1791_s25  ;;  %p1798_p5 = scmp.lt.u32.totalorder %s1791_s25, %s2529_s2 }
  0x25   : > { %p1794_p0 = pnand %p2174_p13, %p1792_p12 }
  0x27   : > { %p1795_p3 = pneg %p1794_p0 }
  0x29   : > { %p1800_p7 = pnand %p1798_p5, %p1795_p3 }
  0x2b   : > { %1803 = shalt.err (!%p1800_p7)
}
  0x2c   : > { %s1804_s23 = scalar_lea.vmem %s2151_s17, 512  ;;  %p1812_p2 = scmp.lt.s32.totalorder %s2151_s17, %s2151_s17 }
  0x2d   : > { %p1805_p9 = scmp.ne.s32.totalorder %s2151_s17, %s1804_s23  ;;  %p1813_p6 = scmp.lt.s32.totalorder %s1804_s23, %s1804_s23 }
  0x2f   : > { %p1807_p10 = pnand %p1805_p9, %p2174_p13  ;;  %p1814_p12 = por %p1813_p6, %p1812_p2 }
  0x31   : > { %p1808_p1 = pneg %p1807_p10 }
  0x33   : > { %p1815_p0 = pnand %p1814_p12, %p1808_p1 }
  0x35   : > { %1818 = shalt.err (!%p1815_p0)
}
  0x36   : > { %s2034_s24 = smov 128   ;;  %s2035_s25 = smov 8  }
  0x37   : > { %1683 = dma.hbm_to_vmem [thread:$0]  (!%p2158_p11), %s2529_s2, 512, %s2151_s17, [#allocation7], %s2034_s24, %s2034_s24, %s2035_s25  }
  0x38   : > { %s2531_s4 = sld [smem:[#allocation21_spill]] }
  0x3e   : > { %s1819_s23 = scalar_lea.hbm %s2531_s4, 512 }
  0x3f   : > { %p1820_p1 = scmp.ne.s32.totalorder %s2531_s4, %s1819_s23  ;;  %p1826_p10 = scmp.lt.u32.totalorder %s1819_s23, %s2531_s4 }
  0x41   : > { %p1822_p2 = pnand %p1820_p1, %p2174_p13 }
  0x43   : > { %p1823_p6 = pneg %p1822_p2 }
  0x45   : > { %p1828_p3 = pnand %p1826_p10, %p1823_p6 }
  0x47   : > { %1831 = shalt.err (!%p1828_p3)
}
  0x48   : > { %s1832_s17 = scalar_lea.vmem %s2162_s20, 512  ;;  %p1840_p12 = scmp.lt.s32.totalorder %s2162_s20, %s2162_s20 }
  0x49   : > { %p1833_p5 = scmp.ne.s32.totalorder %s2162_s20, %s1832_s17  ;;  %p1841_p0 = scmp.lt.s32.totalorder %s1832_s17, %s1832_s17 }
  0x4b   : > { %p1835_p7 = pnand %p1833_p5, %p2174_p13  ;;  %p1842_p1 = por %p1841_p0, %p1840_p12 }
  0x4d   : > { %p1836_p9 = pneg %p1835_p7 }
  0x4f   : > { %p1843_p2 = pnand %p1842_p1, %p1836_p9 }
  0x51   : > { %1846 = shalt.err (!%p1843_p2)
}
  0x52   : > { %1686 = dma.hbm_to_vmem [thread:$0]  (!%p2158_p11), %s2531_s4, 512, %s2162_s20, [#allocation10], %s2034_s24, %s2034_s24, %s2035_s25  }
  0x53   : > { %s2532_s6 = sld [smem:[#allocation22_spill]] }
  0x59   : > { %s1847_s26 = scalar_lea.hbm %s2532_s6, 512 }
  0x5a   : > { %p1848_p6 = scmp.ne.s32.totalorder %s2532_s6, %s1847_s26  ;;  %p1854_p5 = scmp.lt.u32.totalorder %s1847_s26, %s2532_s6 }
  0x5c   : > { %p1850_p10 = pnand %p1848_p6, %p2174_p13 }
  0x5e   : > { %p1851_p3 = pneg %p1850_p10 }
  0x60   : > { %p1856_p7 = pnand %p1854_p5, %p1851_p3 }
  0x62   : > { %1859 = shalt.err (!%p1856_p7)
}
  0x63   : > { %s1860_s17 = scalar_lea.vmem %s298_s22, 512  ;;  %p1868_p1 = scmp.lt.s32.totalorder %s298_s22, %s298_s22 }
  0x64   : > { %p1861_p9 = scmp.ne.s32.totalorder %s298_s22, %s1860_s17  ;;  %p1869_p2 = scmp.lt.s32.totalorder %s1860_s17, %s1860_s17 }
  0x66   : > { %p1863_p12 = pnand %p1861_p9, %p2174_p13  ;;  %p1870_p4 = por %p1869_p2, %p1868_p1 }
  0x68   : > { %p1864_p0 = pneg %p1863_p12 }
  0x6a   : > { %p1871_p8 = pnand %p1870_p4, %p1864_p0 }
  0x6c   : > { %1874 = shalt.err (!%p1871_p8)
}
  0x6d   : > { %1689 = dma.hbm_to_vmem [thread:$0]  (!%p2158_p11), %s2532_s6, 512, %s298_s22, [#allocation10], %s2034_s24, %s2034_s24, %s2035_s25  }
  0x6e   : > { %s49_s16 = sadd.s32 1, %s2017_s29  ;;  %s40_s18 = sadd.s32 1, %s2025_s9 }
  0x6f   : > { %p56_p4 = scmp.ne.s32.totalorder %s2017_s29, %s2013_s28  ;;  %p42_p8 = scmp.ge.s32.totalorder %s40_s18, 2 }
  0x70   : > { %p57_p13 = scmp.eq.s32.totalorder %s2029_s10, 0  ;;  %p2533_p6 = scmp.eq.s32.totalorder %s2128_s11, 1 }
  0x71   : > { %p1704_p3 = scmp.lt.s32.totalorder %s2029_s10, 2  ;;  %s2555_s18 = smov (%p42_p8, %s40_s18), 0 }
  0x72   : > { %p2253_p10 = por %p2533_p6, %p56_p4  ;;  %p58_p5 = por %p57_p13, %p56_p4 }
  0x73   : > { %s314_s27 = sand.u32 1, %s2017_s29   ;;  %s44_s14 = ssub.s32 %s2025_s9, %s2555_s18 }
  0x74   : > { %s2534_s8 = scalar_select %p2253_p10, 1, 0 }
  0x75   : > { %p47_p11 = scmp.eq.s32.totalorder %s44_s14, 0  ;;  %s2263_s22 = sshll.u32 %s314_s27, 3 }
  0x76   : > { %s1508_s24 = sshll.u32 %s2025_s9, 7  ;;  %s318_s21 = scalar_lea.vmem [#allocation3], %s2263_s22 }
  0x77   : > { %s2267_s25 = scalar_select %p47_p11, %s2017_s29, %s49_s16  }
  0x78   : > { %s2272_s19 = scalar_lea.hbm %s2502_s0, %s1508_s24  ;;  %s326_s23 = sshll.u32 %s318_s21, 4  ;;  %s2275_s23 = int_to_ptr.vmem [resolvable:$true] %s326_s23 }
  0x79   : > { %p2279_p7 = pnand %p1704_p3, %p58_p5  ;;  %s2286_s16 = scalar_lea.hbm %s2503_s1, %s1508_s24 }
  0x7a   : > { %s333_s14 = sand.u32 1, %s2029_s10   ;;  %s315_s26 = scalar_lea.sflag [#allocation4], %s314_s27 }
  0x7b   : > { %s1875_s12 = scalar_lea.hbm %s2272_s19, 128  ;;  %p1877_p12 = pneg %p2279_p7 }
  0x7c   : > { %p1876_p9 = scmp.ne.s32.totalorder %s2272_s19, %s1875_s12  ;;  %s1880_s4 = scalar_lea.hbm %s2502_s0, 256 }
  0x7d   : > { %p1881_p2 = scmp.lt.u32.totalorder %s2272_s19, %s2502_s0  ;;  %p1882_p4 = scmp.lt.u32.totalorder %s1880_s4, %s1875_s12 }
  0x7e   : > { %p1878_p0 = pnand %p1877_p12, %p1876_p9  ;;  %p1884_p13 = scmp.lt.u32.totalorder %s1875_s12, %s2272_s19 }
  0x7f   : > { %p1883_p8 = por %p1882_p4, %p1881_p2 }
  0x80   : > { %p1879_p1 = pneg %p1878_p0 }
  0x81   : > { %p1885_p6 = por %p1884_p13, %p1883_p8 }
  0x83   : > { %p1886_p3 = pnand %p1885_p6, %p1879_p1 }
  0x85   : > { %1889 = shalt.err (!%p1886_p3)
}
  0x86   : > { %s1890_s27 = scalar_lea.vmem %s2275_s23, 128  ;;  %s2036_s2 = smov [#allocation3]  }
  0x87   : > { %p1891_p5 = scmp.ne.s32.totalorder %s2275_s23, %s1890_s27  ;;  %s1895_s24 = sshll.u32 %s2036_s2, 4  ;;  %s1896_s24 = int_to_ptr.vmem [resolvable:$false] %s1895_s24 }
  0x88   : > { %s1897_s6 = scalar_lea.vmem %s1896_s24, 256  ;;  %p1898_p0 = scmp.lt.s32.totalorder %s2275_s23, %s1896_s24 }
  0x89   : > { %p1893_p11 = pnand %p1891_p5, %p1877_p12  ;;  %p1899_p2 = scmp.lt.s32.totalorder %s1897_s6, %s1890_s27 }
  0x8b   : > { %p1894_p9 = pneg %p1893_p11  ;;  %p1900_p4 = por %p1899_p2, %p1898_p0 }
  0x8d   : > { %p1901_p8 = pnand %p1900_p4, %p1894_p9 }
  0x8f   : > { %1904 = shalt.err (!%p1901_p8)
}
  0x90   : > { %1693 = dma.hbm_to_vmem [thread:$0]  (!%p2279_p7), %s2272_s19, 128, %s2275_s23, %s315_s26  }
  0x91   : > { %s337_s4 = scalar_lea.vmem [#allocation6], %s2263_s22  ;;  %s334_s12 = scalar_lea.sflag [#allocation7], %s333_s14 }
  0x92   : > { %s344_s7 = sshll.u32 %s337_s4, 4  ;;  %s1905_s21 = scalar_lea.hbm %s2286_s16, 128  ;;  %s345_s7 = int_to_ptr.vmem [resolvable:$true] %s344_s7 }
  0x93   : > { %p1906_p1 = scmp.ne.s32.totalorder %s2286_s16, %s1905_s21  ;;  %s1910_s2 = scalar_lea.hbm %s2503_s1, 256 }
  0x94   : > { %p1911_p3 = scmp.lt.u32.totalorder %s2286_s16, %s2503_s1  ;;  %p1912_p5 = scmp.lt.u32.totalorder %s1910_s2, %s1905_s21 }
  0x95   : > { %p1908_p13 = pnand %p1906_p1, %p1877_p12  ;;  %p1914_p9 = scmp.lt.u32.totalorder %s1905_s21, %s2286_s16 }
  0x96   : > { %p1913_p11 = por %p1912_p5, %p1911_p3 }
  0x97   : > { %p1909_p6 = pneg %p1908_p13 }
  0x98   : > { %p1915_p0 = por %p1914_p9, %p1913_p11 }
  0x9a   : > { %p1916_p2 = pnand %p1915_p0, %p1909_p6 }
  0x9c   : > { %1919 = shalt.err (!%p1916_p2)
}
  0x9d   : > { %s1920_s22 = scalar_lea.vmem %s345_s7, 128  ;;  %s2037_s19 = smov [#allocation6]  }
  0x9e   : > { %p1921_p4 = scmp.ne.s32.totalorder %s345_s7, %s1920_s22  ;;  %s1925_s23 = sshll.u32 %s2037_s19, 4  ;;  %s1926_s23 = int_to_ptr.vmem [resolvable:$false] %s1925_s23 }
  0x9f   : > { %s1927_s14 = scalar_lea.vmem %s1926_s23, 256  ;;  %p1928_p13 = scmp.lt.s32.totalorder %s345_s7, %s1926_s23 }
  0xa0   : > { %p1923_p8 = pnand %p1921_p4, %p1877_p12  ;;  %p1929_p10 = scmp.lt.s32.totalorder %s1927_s14, %s1920_s22 }
  0xa2   : > { %p1924_p1 = pneg %p1923_p8  ;;  %p1930_p3 = por %p1929_p10, %p1928_p13 }
  0xa4   : > { %p1931_p5 = pnand %p1930_p3, %p1924_p1 }
  0xa6   : > { %1934 = shalt.err (!%p1931_p5)
}
  0xa7   : > { %1696 = dma.hbm_to_vmem [thread:$0]  (!%p2279_p7), %s2286_s16, 128, %s345_s7, %s334_s12  }
  0xa8   : > { %p2536_p6 = scmp.ne.s32.totalorder %s2527_s15, 0 }
  0xa9   : > { %s2339_s26 = sand.u32 (!%p2536_p6), 1, %s2013_s28   ;;  %p2537_p10 = scmp.ne.s32.totalorder (!%p2536_p6), %s2524_s13, 0 }
  0xaa   : > { %353 = sbr.rel (%p2536_p6) target bundleno = 1628 (0x65c), region = 52  ;;  %s2342_s4 = sshll.u32 (!%p2536_p6), %s2339_s26, 3 }
  0xab   : > { %s356_s21 = scalar_lea.sflag (!%p2536_p6), [#allocation4], %s2339_s26  ;;  %s359_s20 = scalar_lea.vmem (!%p2536_p6), [#allocation3], %s2342_s4 }
  0xb1   : > { %1988 = dma.done.wait (%p2537_p10), %s356_s21, 128  }
  0xb2   : > { %1990 = vsyncadd (%p2537_p10), %s356_s21, 4294967168  ;;  %s364_s15 = sand.u32 1, %s2128_s11   ;;  %s368_s16 = scalar_lea.vmem [#allocation6], %s2342_s4 }
  0xb3   : > { %s365_s17 = scalar_lea.sflag [#allocation7], %s364_s15 }
  0xb4   : > { %1992 = dma.done.wait (%p2537_p10), %s365_s17, 128  }
  0xb5   : > { %1994 = vsyncadd (%p2537_p10), %s365_s17, 4294967168  ;;  %p2538_p7 = scmp.eq.s32.totalorder %s2128_s11, 0 }
  0xb7   : > { %1996 = dma.done.wait (%p2538_p7), [#allocation7], 512   ;;  %p2539_p12 = pmov %p2538_p7 }
  0xb8   : > { %p2540_p11 = pmov %p2538_p7 }
  0xb9   : > { %1998 = vsyncadd (%p2539_p12), [#allocation7], 4294966784 }
  0xba   : > { %2000 = dma.done.wait (%p2540_p11), [#allocation10], 1024   ;;  %p2541_p9 = pmov %p2538_p7 }
  0xbb   : > { %v2038_v0 = vmov 0.0|0.0   ;;  %vm2039_vm0 = vmmov 0   ;;  %v2040_v1 = vmov 0.0   ;;  %v505_v2 = vld [vmem:[#allocation9] sm:$0xff]  ;;  %v506_v3 = vld [vmem:[#allocation9 + $0x8] sm:$0xff]  ;;  %v507_v7 = vld [vmem:[#allocation9 + $0x10] sm:$0xff] }
  0xbc   : > { %2002 = vsyncadd (%p2541_p9), [#allocation10], 4294966272  ;;  %1650 = vmatprep.subr.bf16.mxu1 %v2038_v0  ;;  %1644 = vmatprep.subr.bf16.mxu0 %v2038_v0  ;;  %v420_v4 = vld [vmem:[#allocation8] sm:$0xff]  ;;  %v1651_v5 = vpack.c.bf16 %v506_v3, %v505_v2  ;;  %v421_v6 = vld [vmem:[#allocation8 + $0x8] sm:$0xff]  ;;  %vm431_vm1 = vcmask 261120   ;;  %vm589_vm2 = vcmask 130048  }
  0xbd   : > { %1590 = vmatprep.mubr.msk.f32.mxu1 %vm2039_vm0, %v2040_v1  ;;  %1579 = vmatprep.mubr.msk.f32.mxu0 %vm2039_vm0, %v2040_v1  ;;  %v508_v8 = vld [vmem:[#allocation9 + $0x18] sm:$0xff]  ;;  %v1645_v9 = vpack.c.bf16 %v421_v6, %v420_v4  ;;  %v422_v10 = vld [vmem:[#allocation8 + $0x10] sm:$0xff]  ;;  %v418_v15 = vld [vmem:[%s359_s20] sm:$0xff]  ;;  %s2041_s27 = smov 96   ;;  %s2042_s2 = smov 112   ;;  %vm666_vm3 = vcmask 64512  }
  0xbe   : > { %v423_v11 = vld [vmem:[#allocation8 + $0x18] sm:$0xff]  ;;  %1652 = vmatpush3.bf16.msra.mxu1 %v1651_v5  ;;  %v1654_v12 = vpack.c.bf16 %v508_v8, %v507_v7  ;;  %s2043_s24 = smov 80   ;;  %s2044_s6 = smov 64   ;;  %vm924_vm4 = vcmask 130112   ;;  %vm1095_vm5 = vcmask 195712   ;;  %vm1266_vm6 = vcmask 261312  }
  0xbf   : > { %1646 = vmatpush3.bf16.msra.mxu0 %v1645_v9  ;;  %1653 = vmatprep.subr.bf16.mxu1 %v2038_v0  ;;  %v1648_v13 = vpack.c.bf16 %v423_v11, %v422_v10  ;;  %v419_v14 = vld [vmem:[%s368_s16] sm:$0xff]  ;;  %s2045_s22 = smov 48   ;;  %s2046_s19 = smov 40  }
  0xc0   : > { %1647 = vmatprep.subr.bf16.mxu0 %v2038_v0  ;;  %v1520_v16 = vld [vmem:[%s2507_s5] ss:$0 sm:$0xff]  ;;  %s2047_s23 = smov 56   ;;  %s2048_s14 = smov 8  }
  0xc1   : > { %v1518_v18 = vld [vmem:[%s2505_s3] ss:$0 sm:$0xff]  ;;  %s2049_s21 = smov 16   ;;  %s2050_s20 = smov 24  }
  0xc2   : > { %1655 = vmatpush3.bf16.msra.mxu1 %v1654_v12  ;;  %s2542_s16 = sld [smem:[#allocation23_spill]]  ;;  %s1537_s11 = sshll.u32 %s2021_s30, 7 }
  0xc3   : > { %1649 = vmatpush3.bf16.msra.mxu0 %v1648_v13  ;;  %1593 = vmatprep.subr.mxu1 %v2040_v1  ;;  %s417_s13 = scalar_lea.vmem [#allocation12], %s2342_s4  ;;  %p2544_p2 = scmp.ne.s32.totalorder %s2534_s8, 0 }
  0xc4   : > { %1603 = vmatprep.subr.mxu0 %v2040_v1  ;;  %s1369_s7 = sshll.u32 %s417_s13, 4  ;;  %s2051_s30 = smov [#allocation12]   ;;  %s2454_s7 = int_to_ptr.vmem [resolvable:$true] %s1369_s7 }
  0xc5   : > { %1591 = vmatmul.mubr.msk.f32.vlgmr.msra.gmra.mrb[0].mxu1 %vm431_vm1, %v419_v14  ;;  %s1939_s4 = sshll.u32 %s2051_s30, 4  ;;  %s1940_s4 = int_to_ptr.vmem [resolvable:$false] %s1939_s4 }
  0xc6   : > { %1580 = vmatmul.mubr.msk.f32.vlgmr.msra.gmra.mrb[0].mxu0 %vm431_vm1, %v418_v15  ;;  %1595 = vmatprep.mubr.msk.f32.mxu1 %vm2039_vm0, %v2040_v1  ;;  %p1942_p1 = scmp.lt.s32.totalorder %s2454_s7, %s1940_s4 }
  0xc7   : > { %1605 = vmatprep.mubr.msk.f32.mxu0 %vm2039_vm0, %v2040_v1 }
 0x198   : > { %v585_v17 = vpop.f32.mrb[0].mxu1 }
 0x199   : > { %v2390_v19 = vadd.f32 %v1520_v16, %v585_v17  ;;  %v1592_v20 = vpop.f32.mrb[1].mxu1  ;;  %v501_v21 = vpop.f32.mrb[0].mxu0 }
 0x19a   : > { %v1581_v22 = vpop.f32.mrb[1].mxu0  ;;  %v502_v23 = vadd.f32 %v1518_v18, %v501_v21  ;;  %v1269_v18 = vld [vmem:[#allocation11] sm:$0xff]  ;;  %v1271_v21 = vld [vmem:[#allocation11 + $0x10] sm:$0xff] }
 0x19b   : > { %928 = vrot.lane.b32.xlu1 %v2390_v19, %s2041_s27  ;;  %757 = vrot.lane.b32.xlu0 %v2390_v19, %s2042_s2  ;;  %v1272_v22 = vld [vmem:[#allocation11 + $0x18] sm:$0xff] }
 0x19c   : > { %1594 = vmatpush3.xpose.msk.msra.mxu1 %vm589_vm2, %v2390_v19 }
 0x19d   : > { %1598 = vmatprep.subr.mxu1 %v2040_v1 }
 0x19f   : > { %1596 = vmatmul.mubr.msk.f32.vlgmr.msra.gmra.mrb[2].mxu1 %vm589_vm2, %v502_v23  ;;  %926 = vrot.lane.b32.xlu1 %v502_v23, %s2041_s27 }
 0x1a0   : > { %755 = vrot.lane.b32.xlu0 %v502_v23, %s2042_s2  ;;  %1600 = vmatprep.mubr.msk.f32.mxu1 %vm2039_vm0, %v2040_v1  ;;  %s2543_s2 = sld [smem:[#allocation24_spill]] }
 0x1a3   : > { %1097 = vrot.lane.b32.xlu1 %v502_v23, %s2043_s24  ;;  %v1660_v23 = vpack.c.bf16 %v1272_v22, %v1271_v21 }
 0x1a4   : > { %1099 = vrot.lane.b32.xlu0 %v2390_v19, %s2043_s24 }
 0x1a6   : > { %s2452_s24 = scalar_lea.hbm %s2543_s2, %s1537_s11 }
 0x20d   : > { %v758_v24 = vpop.permute.xlu0 %757  ;;  %v929_v25 = vpop.permute.xlu1 %928 }
 0x20e   : > { %1604 = vmatpush3.xpose.msk.msra.mxu0 %vm589_vm2, %v758_v24 }
 0x20f   : > { %1613 = vmatprep.subr.mxu0 %v2040_v1 }
 0x211   : > { %v927_v27 = vpop.permute.xlu1 %926 }
 0x212   : > { %v756_v26 = vpop.permute.xlu0 %755 }
 0x213   : > { %1606 = vmatmul.mubr.msk.f32.vlgmr.msra.gmra.mrb[2].mxu0 %vm589_vm2, %v756_v26 }
 0x214   : > { %1614 = vmatpush3.xpose.msk.msra.mxu0 %vm589_vm2, %v929_v25  ;;  %1615 = vmatprep.mubr.msk.f32.mxu0 %vm2039_vm0, %v2040_v1 }
 0x215   : > { %1623 = vmatprep.subr.mxu0 %v2040_v1  ;;  %v1098_v29 = vpop.permute.xlu1 %1097 }
 0x216   : > { %v1100_v28 = vpop.permute.xlu0 %1099 }
 0x217   : > { %1616 = vmatmul.mubr.msk.f32.vlgmr.msra.gmra.mrb[4].mxu0 %vm589_vm2, %v927_v27 }
 0x218   : > { %1624 = vmatpush3.xpose.msk.msra.mxu0 %vm589_vm2, %v1100_v28  ;;  %1625 = vmatprep.mubr.msk.f32.mxu0 %vm2039_vm0, %v2040_v1 }
 0x219   : > { %1656 = vmatprep.subr.bf16.mxu0 %v2038_v0 }
 0x21b   : > { %1626 = vmatmul.mubr.msk.f32.vlgmr.msra.gmra.mrb[6].mxu0 %vm589_vm2, %v1098_v29 }
 0x21c   : > { %1641 = vmatprep.mubr.msk.f32.mxu0 %vm2039_vm0, %v2040_v1 }
 0x272   : > { %v662_v30 = vpop.f32.mrb[2].mxu1 }
 0x273   : > { %v1597_v31 = vpop.f32.mrb[3].mxu1  ;;  %v667_v32 = vsel %vm666_vm3, %v662_v30, -inf }
 0x274   : > { %668 = vmax.xlane.f32.xlu0 %v667_v32  ;;  %v1534_v32 = vld [vmem:[%s2542_s16] ss:$0 sm:$0xff] }
 0x2e6   : > { %v829_v33 = vpop.f32.mrb[2].mxu0 }
 0x2e7   : > { %v1607_v34 = vpop.f32.mrb[3].mxu0  ;;  %v833_v35 = vsel %vm666_vm3, %v829_v33, -inf }
 0x2e8   : > { %834 = vmax.xlane.f32.xlu1 %v833_v35 }
 0x2ea   : > { %v1000_v36 = vpop.f32.mrb[4].mxu0 }
 0x2eb   : > { %v1617_v37 = vpop.f32.mrb[5].mxu0  ;;  %v1004_v38 = vsel %vm666_vm3, %v1000_v36, -inf }
 0x2ec   : > { %1005 = vmax.xlane.f32.xlu0 %v1004_v38 }
 0x2ee   : > { %v1171_v39 = vpop.f32.mrb[6].mxu0 }
 0x2ef   : > { %v1627_v40 = vpop.f32.mrb[7].mxu0  ;;  %v1175_v41 = vsel %vm666_vm3, %v1171_v39, -inf }
 0x2f0   : > { %1176 = vmax.xlane.f32.xlu0 %v1175_v41 }
 0x2f9   : > { %678 = vrot.lane.b32.xlu1 %v2390_v19, %s2044_s6  ;;  %s1355_s6 = scalar_lea.sflag [#allocation5], %s2339_s26 }
 0x301   : > { %v669_v42 = vpop.xlane.xlu0 %668 }
 0x302   : > { %v670_v43 = vsub.f32 %v662_v30, %v669_v42 }
 0x304   : > { %v671_v44 = vmul.f32 1.442695, %v670_v43 }
 0x306   : > { %1775 = vpow2.f32 %v671_v44 }
 0x310   : > { %v1776_v45 = vpop.eup %1775 }
 0x311   : > { %v673_v46 = vsel %vm666_vm3, %v1776_v45, 0.0 }
 0x31d   : > { %674 = vadd.xlane.f32.xlu1 %v673_v46 }
 0x375   : > { %v835_v47 = vpop.xlane.xlu1 %834 }
 0x376   : > { %v836_v48 = vsub.f32 %v829_v33, %v835_v47 }
 0x378   : > { %v837_v49 = vmul.f32 1.442695, %v836_v48 }
 0x379   : > { %v679_v50 = vpop.permute.xlu1 %678  ;;  %v1006_v51 = vpop.xlane.xlu0 %1005 }
 0x37a   : > { %1777 = vpow2.f32 %v837_v49  ;;  %v1007_v52 = vsub.f32 %v1000_v36, %v1006_v51  ;;  %1599 = vmatpush3.msra.mxu1 %v679_v50 }
 0x37b   : > { %1608 = vmatprep.subr.mxu1 %v2040_v1 }
 0x37c   : > { %v1008_v53 = vmul.f32 1.442695, %v1007_v52 }
 0x37d   : > { %v1177_v54 = vpop.xlane.xlu0 %1176 }
 0x37e   : > { %1779 = vpow2.f32 %v1008_v53  ;;  %v1178_v55 = vsub.f32 %v1171_v39, %v1177_v54 }
 0x380   : > { %v1179_v56 = vmul.f32 1.442695, %v1178_v55 }
 0x382   : > { %1781 = vpow2.f32 %v1179_v56 }
 0x384   : > { %v1778_v57 = vpop.eup %1777 }
 0x385   : > { %v839_v58 = vsel %vm666_vm3, %v1778_v57, 0.0 }
 0x386   : > { %840 = vadd.xlane.f32.xlu0 %v839_v58 }
 0x388   : > { %v1780_v59 = vpop.eup %1779 }
 0x389   : > { %v1010_v60 = vsel %vm666_vm3, %v1780_v59, 0.0 }
 0x38a   : > { %1011 = vadd.xlane.f32.xlu1 %v1010_v60 }
 0x38c   : > { %v1782_v61 = vpop.eup %1781 }
 0x38d   : > { %v1181_v62 = vsel %vm666_vm3, %v1782_v61, 0.0 }
 0x38e   : > { %1182 = vadd.xlane.f32.xlu0 %v1181_v62 }
 0x39b   : > { %1015 = vrot.lane.b32.xlu1 %v2390_v19, %s2045_s22  ;;  %s1935_s22 = scalar_lea.vmem %s2454_s7, 128 }
 0x39c   : > { %p1936_p0 = scmp.ne.s32.totalorder %s2454_s7, %s1935_s22 }
 0x39e   : > { %p1937_p4 = pnand %p1936_p0, %p2544_p2 }
 0x39f   : > { %1186 = vrot.lane.b32.xlu1 %v2390_v19, %s2046_s19  ;;  %s1941_s19 = scalar_lea.vmem %s1940_s4, 256 }
 0x3a0   : > { %p1938_p8 = pneg %p1937_p4  ;;  %p1943_p13 = scmp.lt.s32.totalorder %s1941_s19, %s1935_s22 }
 0x3a2   : > { %p1944_p3 = por %p1943_p13, %p1942_p1 }
 0x3a4   : > { %844 = vrot.lane.b32.xlu0 %v2390_v19, %s2047_s23  ;;  %v1270_v19 = vld [vmem:[#allocation11 + $0x8] sm:$0xff]  ;;  %p1945_p5 = pnand %p1944_p3, %p1938_p8 }
 0x3a5   : > { %v1657_v20 = vpack.c.bf16 %v1270_v19, %v1269_v18 }
 0x3a7   : > { %1658 = vmatpush3.bf16.msra.mxu0 %v1657_v20 }
 0x3a8   : > { %1659 = vmatprep.subr.bf16.mxu0 %v2038_v0 }
 0x3aa   : > { %v675_v63 = vpop.xlane.xlu1 %674 }
 0x3ab   : > { %1783 = vrcp.f32 %v675_v63  ;;  %1661 = vmatpush3.bf16.msra.mxu0 %v1660_v23 }
 0x3b5   : > { %v1784_v2 = vpop.eup %1783 }
 0x3b6   : > { %v677_v3 = vmul.f32 %v1784_v2, %v1776_v45 }
 0x3b8   : > { %1601 = vmatmul.mubr.msk.f32.vlgmr.msra.gmra.mrb[4].mxu1 %vm666_vm3, %v677_v3 }
 0x3b9   : > { %1610 = vmatprep.mubr.msk.f32.mxu1 %vm2039_vm0, %v2040_v1 }
 0x413   : > { %v841_v4 = vpop.xlane.xlu0 %840 }
 0x414   : > { %1785 = vrcp.f32 %v841_v4 }
 0x417   : > { %v1012_v5 = vpop.xlane.xlu1 %1011 }
 0x418   : > { %1787 = vrcp.f32 %v1012_v5 }
 0x41b   : > { %v1183_v6 = vpop.xlane.xlu0 %1182  ;;  %v1016_v9 = vpop.permute.xlu1 %1015 }
 0x41c   : > { %1789 = vrcp.f32 %v1183_v6 }
 0x41e   : > { %v1786_v7 = vpop.eup %1785 }
 0x41f   : > { %v843_v8 = vmul.f32 %v1786_v7, %v1778_v57  ;;  %v845_v10 = vpop.permute.xlu0 %844  ;;  %v1187_v13 = vpop.permute.xlu1 %1186 }
 0x420   : > { %1609 = vmatpush3.msra.mxu1 %v845_v10 }
 0x421   : > { %1611 = vmatmul.mubr.msk.f32.vlgmr.msra.gmra.mrb[6].mxu1 %vm666_vm3, %v843_v8  ;;  %1618 = vmatprep.subr.mxu1 %v2040_v1 }
 0x422   : > { %v1788_v11 = vpop.eup %1787  ;;  %1619 = vmatpush3.msra.mxu1 %v1016_v9  ;;  %1620 = vmatprep.mubr.msk.f32.mxu1 %vm2039_vm0, %v2040_v1 }
 0x423   : > { %v1014_v12 = vmul.f32 %v1788_v11, %v1780_v59  ;;  %1628 = vmatprep.subr.mxu1 %v2040_v1 }
 0x425   : > { %1621 = vmatmul.mubr.msk.f32.vlgmr.msra.gmra.mrb[8].mxu1 %vm666_vm3, %v1014_v12 }
 0x426   : > { %v1790_v14 = vpop.eup %1789  ;;  %1629 = vmatpush3.msra.mxu1 %v1187_v13  ;;  %1630 = vmatprep.mubr.msk.f32.mxu1 %vm2039_vm0, %v2040_v1 }
 0x427   : > { %v1185_v15 = vmul.f32 %v1790_v14, %v1782_v61 }
 0x429   : > { %1631 = vmatmul.mubr.msk.f32.vlgmr.msra.gmra.mrb[10].mxu1 %vm666_vm3, %v1185_v15 }
 0x48b   : > { %v750_v16 = vpop.f32.mrb[4].mxu1 }
 0x48c   : > { %754 = vst.msk [vmem:[#allocation2] sm:$0xff] %vm666_vm3, %v750_v16  ;;  %v1602_v17 = vpop.f32.mrb[5].mxu1 }
 0x4f4   : > { %v916_v24 = vpop.f32.mrb[6].mxu1 }
 0x4f5   : > { %921 = vrot.lane.b32.xlu0 %v916_v24, %s2048_s14  ;;  %v1612_v1 = vpop.f32.mrb[7].mxu1 }
 0x4f8   : > { %v1087_v25 = vpop.f32.mrb[8].mxu1 }
 0x4f9   : > { %1092 = vrot.lane.b32.xlu1 %v1087_v25, %s2049_s21  ;;  %v1622_v26 = vpop.f32.mrb[9].mxu1 }
 0x4fc   : > { %v1258_v27 = vpop.f32.mrb[10].mxu1 }
 0x4fd   : > { %1263 = vrot.lane.b32.xlu0 %v1258_v27, %s2050_s20  ;;  %v1632_v28 = vpop.f32.mrb[11].mxu1 }
 0x567   : > { %v922_v29 = vpop.permute.xlu0 %921 }
 0x568   : > { %925 = vst.msk [vmem:[#allocation2] sm:$0xff] %vm924_vm4, %v922_v29 }
 0x56b   : > { %v1093_v0 = vpop.permute.xlu1 %1092 }
 0x56c   : > { %1096 = vst.msk [vmem:[#allocation2] sm:$0xff] %vm1095_vm5, %v1093_v0 }
 0x56f   : > { %v1264_v30 = vpop.permute.xlu0 %1263 }
 0x570   : > { %1267 = vst.msk [vmem:[#allocation2] sm:$0xff] %vm1266_vm6, %v1264_v30 }
 0x577   : > { %v1268_v31 = vld [vmem:[#allocation2] sm:$0xff] }
 0x578   : > { %1642 = vmatmul.mubr.msk.f32.vlgmr.msra.gmra.mrb[8].mxu0 %vm431_vm1, %v1268_v31 }
 0x64b   : > { %v1349_v33 = vpop.f32.mrb[8].mxu0 }
 0x64c   : > { %v1350_v34 = vadd.f32 %v1534_v32, %v1349_v33  ;;  %v1643_v35 = vpop.f32.mrb[9].mxu0 }
 0x64e   : > { %1353 = vst.msk [vmem:[%s417_s13] sm:$0xff] %vm431_vm1, %v1350_v34 }
 0x64f   : > { %1948 = shalt.err (!%p1945_p5)
}
 0x650   : > { %s1949_s26 = scalar_lea.hbm %s2452_s24, 128  ;;  %s1953_s21 = scalar_lea.hbm %s2543_s2, 256 }
 0x651   : > { %p1950_p6 = scmp.ne.s32.totalorder %s2452_s24, %s1949_s26  ;;  %p1954_p12 = scmp.lt.u32.totalorder %s2452_s24, %s2543_s2 }
 0x652   : > { %p1955_p11 = scmp.lt.u32.totalorder %s1953_s21, %s1949_s26  ;;  %p1957_p0 = scmp.lt.u32.totalorder %s1949_s26, %s2452_s24 }
 0x653   : > { %p1951_p10 = pnand %p1950_p6, %p2544_p2 }
 0x654   : > { %p1956_p9 = por %p1955_p11, %p1954_p12 }
 0x655   : > { %p1952_p7 = pneg %p1951_p10 }
 0x656   : > { %p1958_p4 = por %p1957_p0, %p1956_p9 }
 0x658   : > { %p1959_p8 = pnand %p1958_p4, %p1952_p7 }
 0x65a   : > { %1962 = shalt.err (!%p1959_p8)
}
 0x65b   : > { %1678 = dma.vmem_to_hbm [thread:$0]  (%p2544_p2), %s2454_s7, 128, %s2452_s24, %s1355_s6  }
 0x65c PF: > { %s2545_s17 = sld [smem:[#allocation18_spill]]  ;;  %s2546_s16 = sld [smem:[#allocation19_spill]] }
 0x65d   : > { %p2548_p13 = scmp.ge.s32.totalorder %s2029_s10, 2 }
 0x662   : > { %s1381_s11 = sand.u32 1, %s2545_s17   ;;  %p2547_p1 = scmp.ne.s32.totalorder %s2546_s16, 0 }
 0x663   : > { %s1382_s13 = scalar_lea.sflag [#allocation5], %s1381_s11 }
 0x664   : > { %p1698_p3 = pnand %p2548_p13, %p2547_p1 }
 0x666   : > { %2004 = dma.done.wait (!%p1698_p3), %s1382_s13, 128  }
 0x667   : > { %2006 = vsyncadd (!%p1698_p3), %s1382_s13, 4294967168  ;;  %s28_s10 = sadd.s32 1, %s2029_s10   ;;  %s2549_s27 = smov %s2013_s28 }
 0x668   : > { %p25_p5 = scmp.ge.s32.totalorder %s28_s10, 4   ;;  %s2550_s28 = smov %s2017_s29 }
 0x669   : > { %s2551_s29 = smov %s2267_s25  ;;  %s2552_s30 = smov %s2025_s9 }
 0x66a   : > { %s2553_s9 = smov %s2555_s18  ;;  %27 = sbr.rel (!%p25_p5) target bundleno = 15 (0xf), region = 122 }
 0x671   :  { %1387 = vsyncpa [#allocation4], 1 }
 0x672   :  { %1389 = vsyncpa [#allocation4 + $0x1], 1 }
 0x673   :  { %1390 = vsyncpa [#allocation7], 1 }
 0x674   :  { %1392 = vsyncpa [#allocation7 + $0x1], 1 }
 0x675   :  { %1393 = vsyncpa [#allocation10], 1 }
 0x676   :  { %1394 = vsyncpa [#allocation5], 1 }
 0x677   :  { %1396 = vsyncpa [#allocation5 + $0x1], 1 }

// kernel: tpu_custom_call.1
= control target key start
LH: loop header
LB: loop body
LE: loop exit
PB: predicated region body
PF: predicated region fallthrough
CT: control target
= control target key end

     0   :  { %s2502_s0 = inlined_call_operand.hbm [shape: f32[2,8,32], index: 0, kind: input, shape index: {}]   ;;  %s2503_s1 = inlined_call_operand.hbm [shape: f32[2,8,32], index: 1, kind: input, shape index: {}]   ;;  %s2504_s2 = inlined_call_operand.hbm [shape: f32[32,64], index: 2, kind: input, shape index: {}]   ;;  %s2505_s3 = inlined_call_operand.vmem [shape: f32[1,64], index: 3, kind: input, shape index: {}]   ;;  %s2506_s4 = inlined_call_operand.hbm [shape: f32[32,96], index: 4, kind: input, shape index: {}]   ;;  %s2507_s5 = inlined_call_operand.vmem [shape: f32[1,96], index: 5, kind: input, shape index: {}]   ;;  %s2508_s6 = inlined_call_operand.hbm [shape: f32[32,32], index: 6, kind: input, shape index: {}]   ;;  %s2509_s7 = inlined_call_operand.vmem [shape: f32[1,32], index: 7, kind: input, shape index: {}]   ;;  %s2510_s8 = inlined_call_operand.hbm [shape: f32[2,8,32], index: 8, kind: output, shape index: {}]  }
   0x1   :  { %2518 = sst [smem:[#allocation20_spill]] %s2504_s2 }
   0x2   :  { %2519 = sst [smem:[#allocation21_spill]] %s2506_s4 }
   0x3   :  { %2520 = sst [smem:[#allocation22_spill]] %s2508_s6 }
   0x4   :  { %2521 = sst [smem:[#allocation23_spill]] %s2509_s7 }
   0x5   :  { %2522 = sst [smem:[#allocation24_spill]] %s2510_s8 }
   0x6   :  { %13 = vsyncpa [#allocation4], 0 }
   0x7   :  { %15 = vsyncpa [#allocation4 + $0x1], 0 }
   0x8   :  { %16 = vsyncpa [#allocation7], 0 }
   0x9   :  { %18 = vsyncpa [#allocation7 + $0x1], 0 }
   0xa   :  { %19 = vsyncpa [#allocation10], 0 }
   0xb   :  { %20 = vsyncpa [#allocation5], 0 }
   0xc   :  { %22 = vsyncpa [#allocation5 + $0x1], 0  ;;  %s2097_s27 = smov 0   ;;  %s2099_s28 = smov 0  }
   0xd   :  { %s2101_s29 = smov 0   ;;  %s2103_s30 = smov 0  }
   0xe   :  { %s2105_s9 = smov 0   ;;  %s2107_s10 = smov 0  }
   0xf LB: > { %2523 = sst [smem:[#allocation18_spill]] %s2009_s27  ;;  %s2128_s11 = sadd.s32 4294967295, %s2029_s10   ;;  %s2029_s10 = sphi %s2107_s10, %s28_s10   ;;  %s2025_s9 = sphi %s2105_s9, %s2553_s9   ;;  %s2021_s30 = sphi %s2103_s30, %s2552_s30   ;;  %s2017_s29 = sphi %s2101_s29, %s2551_s29   ;;  %s2013_s28 = sphi %s2099_s28, %s2550_s28   ;;  %s2009_s27 = sphi %s2097_s27, %s2549_s27  }
  0x10   : > { %s1501_s12 = sadd.s32 4294967294, %s2029_s10   ;;  %p62_p0 = scmp.ne.s32.totalorder %s2013_s28, %s2009_s27 }
  0x11   : > { %p2511_p1 = scmp.eq.s32.totalorder %s2128_s11, 0  ;;  %p246_p3 = scmp.eq.s32.totalorder %s1501_s12, 1 }
  0x12   : > { %p1502_p5 = scmp.ge.s32.totalorder %s2029_s10, 1  ;;  %p253_p7 = scmp.lt.s32.totalorder %s2029_s10, 3 }
  0x13   : > { %p2137_p4 = por %p2511_p1, %p62_p0  ;;  %p2142_p6 = por %p246_p3, %p62_p0 }
  0x14   : > { %p2147_p8 = pnand %p1502_p5, %p253_p7  ;;  %s2031_s16 = smov [#allocation8]  }
  0x15   : > { %s2524_s13 = scalar_select %p2137_p4, 1, 0 }
  0x16   : > { %s2525_s14 = scalar_select %p2142_p6, 1, 0 }
  0x17   : > { %s2527_s15 = scalar_select %p2147_p8, 1, 0 }
  0x18   : > { %2526 = sst [smem:[#allocation19_spill]] %s2525_s14  ;;  %s265_s17 = sshll.u32 %s2031_s16, 4  ;;  %s2151_s17 = int_to_ptr.vmem [resolvable:$true] %s265_s17 }
  0x19   : > { %p1680_p9 = pneg %p2147_p8  ;;  %s2032_s19 = smov [#allocation9]  }
  0x1a   : > { %s281_s20 = sshll.u32 %s2032_s19, 4  ;;  %s2033_s21 = smov [#allocation11]   ;;  %s2162_s20 = int_to_ptr.vmem [resolvable:$true] %s281_s20 }
  0x1b   : > { %p2158_p11 = pnand %p1680_p9, %p2511_p1  ;;  %s2164_s22 = sshll.u32 %s2033_s21, 4  ;;  %s298_s22 = int_to_ptr.vmem [resolvable:$true] %s2164_s22 }
  0x1c   : > { %s2529_s2 = sld [smem:[#allocation20_spill]] }
  0x1d   : > { %p2174_p13 = pneg %p2158_p11 }
  0x22   : > { %s1791_s25 = scalar_lea.hbm %s2529_s2, 512 }
  0x23   : > { %p1792_p12 = scmp.ne.s32.totalorder %s2529_s2, %s1791_s25  ;;  %p1798_p5 = scmp.lt.u32.totalorder %s1791_s25, %s2529_s2 }
  0x25   : > { %p1794_p0 = pnand %p2174_p13, %p1792_p12 }
  0x27   : > { %p1795_p3 = pneg %p1794_p0 }
  0x29   : > { %p1800_p7 = pnand %p1798_p5, %p1795_p3 }
  0x2b   : > { %1803 = shalt.err (!%p1800_p7)
}
  0x2c   : > { %s1804_s23 = scalar_lea.vmem %s2151_s17, 512  ;;  %p1812_p2 = scmp.lt.s32.totalorder %s2151_s17, %s2151_s17 }
  0x2d   : > { %p1805_p9 = scmp.ne.s32.totalorder %s2151_s17, %s1804_s23  ;;  %p1813_p6 = scmp.lt.s32.totalorder %s1804_s23, %s1804_s23 }
  0x2f   : > { %p1807_p10 = pnand %p1805_p9, %p2174_p13  ;;  %p1814_p12 = por %p1813_p6, %p1812_p2 }
  0x31   : > { %p1808_p1 = pneg %p1807_p10 }
  0x33   : > { %p1815_p0 = pnand %p1814_p12, %p1808_p1 }
  0x35   : > { %1818 = shalt.err (!%p1815_p0)
}
  0x36   : > { %s2034_s24 = smov 128   ;;  %s2035_s25 = smov 8  }
  0x37   : > { %1683 = dma.hbm_to_vmem [thread:$0]  (!%p2158_p11), %s2529_s2, 512, %s2151_s17, [#allocation7], %s2034_s24, %s2034_s24, %s2035_s25  }
  0x38   : > { %s2531_s4 = sld [smem:[#allocation21_spill]] }
  0x3e   : > { %s1819_s23 = scalar_lea.hbm %s2531_s4, 512 }
  0x3f   : > { %p1820_p1 = scmp.ne.s32.totalorder %s2531_s4, %s1819_s23  ;;  %p1826_p10 = scmp.lt.u32.totalorder %s1819_s23, %s2531_s4 }
  0x41   : > { %p1822_p2 = pnand %p1820_p1, %p2174_p13 }
  0x43   : > { %p1823_p6 = pneg %p1822_p2 }
  0x45   : > { %p1828_p3 = pnand %p1826_p10, %p1823_p6 }
  0x47   : > { %1831 = shalt.err (!%p1828_p3)
}
  0x48   : > { %s1832_s17 = scalar_lea.vmem %s2162_s20, 512  ;;  %p1840_p12 = scmp.lt.s32.totalorder %s2162_s20, %s2162_s20 }
  0x49   : > { %p1833_p5 = scmp.ne.s32.totalorder %s2162_s20, %s1832_s17  ;;  %p1841_p0 = scmp.lt.s32.totalorder %s1832_s17, %s1832_s17 }
  0x4b   : > { %p1835_p7 = pnand %p1833_p5, %p2174_p13  ;;  %p1842_p1 = por %p1841_p0, %p1840_p12 }
  0x4d   : > { %p1836_p9 = pneg %p1835_p7 }
  0x4f   : > { %p1843_p2 = pnand %p1842_p1, %p1836_p9 }
  0x51   : > { %1846 = shalt.err (!%p1843_p2)
}
  0x52   : > { %1686 = dma.hbm_to_vmem [thread:$0]  (!%p2158_p11), %s2531_s4, 512, %s2162_s20, [#allocation10], %s2034_s24, %s2034_s24, %s2035_s25  }
  0x53   : > { %s2532_s6 = sld [smem:[#allocation22_spill]] }
  0x59   : > { %s1847_s26 = scalar_lea.hbm %s2532_s6, 512 }
  0x5a   : > { %p1848_p6 = scmp.ne.s32.totalorder %s2532_s6, %s1847_s26  ;;  %p1854_p5 = scmp.lt.u32.totalorder %s1847_s26, %s2532_s6 }
  0x5c   : > { %p1850_p10 = pnand %p1848_p6, %p2174_p13 }
  0x5e   : > { %p1851_p3 = pneg %p1850_p10 }
  0x60   : > { %p1856_p7 = pnand %p1854_p5, %p1851_p3 }
  0x62   : > { %1859 = shalt.err (!%p1856_p7)
}
  0x63   : > { %s1860_s17 = scalar_lea.vmem %s298_s22, 512  ;;  %p1868_p1 = scmp.lt.s32.totalorder %s298_s22, %s298_s22 }
  0x64   : > { %p1861_p9 = scmp.ne.s32.totalorder %s298_s22, %s1860_s17  ;;  %p1869_p2 = scmp.lt.s32.totalorder %s1860_s17, %s1860_s17 }
  0x66   : > { %p1863_p12 = pnand %p1861_p9, %p2174_p13  ;;  %p1870_p4 = por %p1869_p2, %p1868_p1 }
  0x68   : > { %p1864_p0 = pneg %p1863_p12 }
  0x6a   : > { %p1871_p8 = pnand %p1870_p4, %p1864_p0 }
  0x6c   : > { %1874 = shalt.err (!%p1871_p8)
}
  0x6d   : > { %1689 = dma.hbm_to_vmem [thread:$0]  (!%p2158_p11), %s2532_s6, 512, %s298_s22, [#allocation10], %s2034_s24, %s2034_s24, %s2035_s25  }
  0x6e   : > { %s49_s16 = sadd.s32 1, %s2017_s29  ;;  %s40_s18 = sadd.s32 1, %s2025_s9 }
  0x6f   : > { %p56_p4 = scmp.ne.s32.totalorder %s2017_s29, %s2013_s28  ;;  %p42_p8 = scmp.ge.s32.totalorder %s40_s18, 2 }
  0x70   : > { %p57_p13 = scmp.eq.s32.totalorder %s2029_s10, 0  ;;  %p2533_p6 = scmp.eq.s32.totalorder %s2128_s11, 1 }
  0x71   : > { %p1704_p3 = scmp.lt.s32.totalorder %s2029_s10, 2  ;;  %s2555_s18 = smov (%p42_p8, %s40_s18), 0 }
  0x72   : > { %p2253_p10 = por %p2533_p6, %p56_p4  ;;  %p58_p5 = por %p57_p13, %p56_p4 }
  0x73   : > { %s314_s27 = sand.u32 1, %s2017_s29   ;;  %s44_s14 = ssub.s32 %s2025_s9, %s2555_s18 }
  0x74   : > { %s2534_s8 = scalar_select %p2253_p10, 1, 0 }
  0x75   : > { %p47_p11 = scmp.eq.s32.totalorder %s44_s14, 0  ;;  %s2263_s22 = sshll.u32 %s314_s27, 3 }
  0x76   : > { %s1508_s24 = sshll.u32 %s2025_s9, 7  ;;  %s318_s21 = scalar_lea.vmem [#allocation3], %s2263_s22 }
  0x77   : > { %s2267_s25 = scalar_select %p47_p11, %s2017_s29, %s49_s16  }
  0x78   : > { %s2272_s19 = scalar_lea.hbm %s2502_s0, %s1508_s24  ;;  %s326_s23 = sshll.u32 %s318_s21, 4  ;;  %s2275_s23 = int_to_ptr.vmem [resolvable:$true] %s326_s23 }
  0x79   : > { %p2279_p7 = pnand %p1704_p3, %p58_p5  ;;  %s2286_s16 = scalar_lea.hbm %s2503_s1, %s1508_s24 }
  0x7a   : > { %s333_s14 = sand.u32 1, %s2029_s10   ;;  %s315_s26 = scalar_lea.sflag [#allocation4], %s314_s27 }
  0x7b   : > { %s1875_s12 = scalar_lea.hbm %s2272_s19, 128  ;;  %p1877_p12 = pneg %p2279_p7 }
  0x7c   : > { %p1876_p9 = scmp.ne.s32.totalorder %s2272_s19, %s1875_s12  ;;  %s1880_s4 = scalar_lea.hbm %s2502_s0, 256 }
  0x7d   : > { %p1881_p2 = scmp.lt.u32.totalorder %s2272_s19, %s2502_s0  ;;  %p1882_p4 = scmp.lt.u32.totalorder %s1880_s4, %s1875_s12 }
  0x7e   : > { %p1878_p0 = pnand %p1877_p12, %p1876_p9  ;;  %p1884_p13 = scmp.lt.u32.totalorder %s1875_s12, %s2272_s19 }
  0x7f   : > { %p1883_p8 = por %p1882_p4, %p1881_p2 }
  0x80   : > { %p1879_p1 = pneg %p1878_p0 }
  0x81   : > { %p1885_p6 = por %p1884_p13, %p1883_p8 }
  0x83   : > { %p1886_p3 = pnand %p1885_p6, %p1879_p1 }
  0x85   : > { %1889 = shalt.err (!%p1886_p3)
}
  0x86   : > { %s1890_s27 = scalar_lea.vmem %s2275_s23, 128  ;;  %s2036_s2 = smov [#allocation3]  }
  0x87   : > { %p1891_p5 = scmp.ne.s32.totalorder %s2275_s23, %s1890_s27  ;;  %s1895_s24 = sshll.u32 %s2036_s2, 4  ;;  %s1896_s24 = int_to_ptr.vmem [resolvable:$false] %s1895_s24 }
  0x88   : > { %s1897_s6 = scalar_lea.vmem %s1896_s24, 256  ;;  %p1898_p0 = scmp.lt.s32.totalorder %s2275_s23, %s1896_s24 }
  0x89   : > { %p1893_p11 = pnand %p1891_p5, %p1877_p12  ;;  %p1899_p2 = scmp.lt.s32.totalorder %s1897_s6, %s1890_s27 }
  0x8b   : > { %p1894_p9 = pneg %p1893_p11  ;;  %p1900_p4 = por %p1899_p2, %p1898_p0 }
  0x8d   : > { %p1901_p8 = pnand %p1900_p4, %p1894_p9 }
  0x8f   : > { %1904 = shalt.err (!%p1901_p8)
}
  0x90   : > { %1693 = dma.hbm_to_vmem [thread:$0]  (!%p2279_p7), %s2272_s19, 128, %s2275_s23, %s315_s26  }
  0x91   : > { %s337_s4 = scalar_lea.vmem [#allocation6], %s2263_s22  ;;  %s334_s12 = scalar_lea.sflag [#allocation7], %s333_s14 }
  0x92   : > { %s344_s7 = sshll.u32 %s337_s4, 4  ;;  %s1905_s21 = scalar_lea.hbm %s2286_s16, 128  ;;  %s345_s7 = int_to_ptr.vmem [resolvable:$true] %s344_s7 }
  0x93   : > { %p1906_p1 = scmp.ne.s32.totalorder %s2286_s16, %s1905_s21  ;;  %s1910_s2 = scalar_lea.hbm %s2503_s1, 256 }
  0x94   : > { %p1911_p3 = scmp.lt.u32.totalorder %s2286_s16, %s2503_s1  ;;  %p1912_p5 = scmp.lt.u32.totalorder %s1910_s2, %s1905_s21 }
  0x95   : > { %p1908_p13 = pnand %p1906_p1, %p1877_p12  ;;  %p1914_p9 = scmp.lt.u32.totalorder %s1905_s21, %s2286_s16 }
  0x96   : > { %p1913_p11 = por %p1912_p5, %p1911_p3 }
  0x97   : > { %p1909_p6 = pneg %p1908_p13 }
  0x98   : > { %p1915_p0 = por %p1914_p9, %p1913_p11 }
  0x9a   : > { %p1916_p2 = pnand %p1915_p0, %p1909_p6 }
  0x9c   : > { %1919 = shalt.err (!%p1916_p2)
}
  0x9d   : > { %s1920_s22 = scalar_lea.vmem %s345_s7, 128  ;;  %s2037_s19 = smov [#allocation6]  }
  0x9e   : > { %p1921_p4 = scmp.ne.s32.totalorder %s345_s7, %s1920_s22  ;;  %s1925_s23 = sshll.u32 %s2037_s19, 4  ;;  %s1926_s23 = int_to_ptr.vmem [resolvable:$false] %s1925_s23 }
  0x9f   : > { %s1927_s14 = scalar_lea.vmem %s1926_s23, 256  ;;  %p1928_p13 = scmp.lt.s32.totalorder %s345_s7, %s1926_s23 }
  0xa0   : > { %p1923_p8 = pnand %p1921_p4, %p1877_p12  ;;  %p1929_p10 = scmp.lt.s32.totalorder %s1927_s14, %s1920_s22 }
  0xa2   : > { %p1924_p1 = pneg %p1923_p8  ;;  %p1930_p3 = por %p1929_p10, %p1928_p13 }
  0xa4   : > { %p1931_p5 = pnand %p1930_p3, %p1924_p1 }
  0xa6   : > { %1934 = shalt.err (!%p1931_p5)
}
  0xa7   : > { %1696 = dma.hbm_to_vmem [thread:$0]  (!%p2279_p7), %s2286_s16, 128, %s345_s7, %s334_s12  }
  0xa8   : > { %p2536_p6 = scmp.ne.s32.totalorder %s2527_s15, 0 }
  0xa9   : > { %s2339_s26 = sand.u32 (!%p2536_p6), 1, %s2013_s28   ;;  %p2537_p10 = scmp.ne.s32.totalorder (!%p2536_p6), %s2524_s13, 0 }
  0xaa   : > { %353 = sbr.rel (%p2536_p6) target bundleno = 1628 (0x65c), region = 52  ;;  %s2342_s4 = sshll.u32 (!%p2536_p6), %s2339_s26, 3 }
  0xab   : > { %s356_s21 = scalar_lea.sflag (!%p2536_p6), [#allocation4], %s2339_s26  ;;  %s359_s20 = scalar_lea.vmem (!%p2536_p6), [#allocation3], %s2342_s4 }
  0xb1   : > { %1988 = dma.done.wait (%p2537_p10), %s356_s21, 128  }
  0xb2   : > { %1990 = vsyncadd (%p2537_p10), %s356_s21, 4294967168  ;;  %s364_s15 = sand.u32 1, %s2128_s11   ;;  %s368_s16 = scalar_lea.vmem [#allocation6], %s2342_s4 }
  0xb3   : > { %s365_s17 = scalar_lea.sflag [#allocation7], %s364_s15 }
  0xb4   : > { %1992 = dma.done.wait (%p2537_p10), %s365_s17, 128  }
  0xb5   : > { %1994 = vsyncadd (%p2537_p10), %s365_s17, 4294967168  ;;  %p2538_p7 = scmp.eq.s32.totalorder %s2128_s11, 0 }
  0xb7   : > { %1996 = dma.done.wait (%p2538_p7), [#allocation7], 512   ;;  %p2539_p12 = pmov %p2538_p7 }
  0xb8   : > { %p2540_p11 = pmov %p2538_p7 }
  0xb9   : > { %1998 = vsyncadd (%p2539_p12), [#allocation7], 4294966784 }
  0xba   : > { %2000 = dma.done.wait (%p2540_p11), [#allocation10], 1024   ;;  %p2541_p9 = pmov %p2538_p7 }
  0xbb   : > { %v2038_v0 = vmov 0.0|0.0   ;;  %vm2039_vm0 = vmmov 0   ;;  %v2040_v1 = vmov 0.0   ;;  %v505_v2 = vld [vmem:[#allocation9] sm:$0xff]  ;;  %v506_v3 = vld [vmem:[#allocation9 + $0x8] sm:$0xff]  ;;  %v507_v7 = vld [vmem:[#allocation9 + $0x10] sm:$0xff] }
  0xbc   : > { %2002 = vsyncadd (%p2541_p9), [#allocation10], 4294966272  ;;  %1650 = vmatprep.subr.bf16.mxu1 %v2038_v0  ;;  %1644 = vmatprep.subr.bf16.mxu0 %v2038_v0  ;;  %v420_v4 = vld [vmem:[#allocation8] sm:$0xff]  ;;  %v1651_v5 = vpack.c.bf16 %v506_v3, %v505_v2  ;;  %v421_v6 = vld [vmem:[#allocation8 + $0x8] sm:$0xff]  ;;  %vm431_vm1 = vcmask 261120   ;;  %vm589_vm2 = vcmask 130048  }
  0xbd   : > { %1590 = vmatprep.mubr.msk.f32.mxu1 %vm2039_vm0, %v2040_v1  ;;  %1579 = vmatprep.mubr.msk.f32.mxu0 %vm2039_vm0, %v2040_v1  ;;  %v508_v8 = vld [vmem:[#allocation9 + $0x18] sm:$0xff]  ;;  %v1645_v9 = vpack.c.bf16 %v421_v6, %v420_v4  ;;  %v422_v10 = vld [vmem:[#allocation8 + $0x10] sm:$0xff]  ;;  %v418_v15 = vld [vmem:[%s359_s20] sm:$0xff]  ;;  %s2041_s27 = smov 96   ;;  %s2042_s2 = smov 112   ;;  %vm666_vm3 = vcmask 64512  }
  0xbe   : > { %v423_v11 = vld [vmem:[#allocation8 + $0x18] sm:$0xff]  ;;  %1652 = vmatpush3.bf16.msra.mxu1 %v1651_v5  ;;  %v1654_v12 = vpack.c.bf16 %v508_v8, %v507_v7  ;;  %s2043_s24 = smov 80   ;;  %s2044_s6 = smov 64   ;;  %vm924_vm4 = vcmask 130112   ;;  %vm1095_vm5 = vcmask 195712   ;;  %vm1266_vm6 = vcmask 261312  }
  0xbf   : > { %1646 = vmatpush3.bf16.msra.mxu0 %v1645_v9  ;;  %1653 = vmatprep.subr.bf16.mxu1 %v2038_v0  ;;  %v1648_v13 = vpack.c.bf16 %v423_v11, %v422_v10  ;;  %v419_v14 = vld [vmem:[%s368_s16] sm:$0xff]  ;;  %s2045_s22 = smov 48   ;;  %s2046_s19 = smov 40  }
  0xc0   : > { %1647 = vmatprep.subr.bf16.mxu0 %v2038_v0  ;;  %v1520_v16 = vld [vmem:[%s2507_s5] ss:$0 sm:$0xff]  ;;  %s2047_s23 = smov 56   ;;  %s2048_s14 = smov 8  }
  0xc1   : > { %v1518_v18 = vld [vmem:[%s2505_s3] ss:$0 sm:$0xff]  ;;  %s2049_s21 = smov 16   ;;  %s2050_s20 = smov 24  }
  0xc2   : > { %1655 = vmatpush3.bf16.msra.mxu1 %v1654_v12  ;;  %s2542_s16 = sld [smem:[#allocation23_spill]]  ;;  %s1537_s11 = sshll.u32 %s2021_s30, 7 }
  0xc3   : > { %1649 = vmatpush3.bf16.msra.mxu0 %v1648_v13  ;;  %1593 = vmatprep.subr.mxu1 %v2040_v1  ;;  %s417_s13 = scalar_lea.vmem [#allocation12], %s2342_s4  ;;  %p2544_p2 = scmp.ne.s32.totalorder %s2534_s8, 0 }
  0xc4   : > { %1603 = vmatprep.subr.mxu0 %v2040_v1  ;;  %s1369_s7 = sshll.u32 %s417_s13, 4  ;;  %s2051_s30 = smov [#allocation12]   ;;  %s2454_s7 = int_to_ptr.vmem [resolvable:$true] %s1369_s7 }
  0xc5   : > { %1591 = vmatmul.mubr.msk.f32.vlgmr.msra.gmra.mrb[0].mxu1 %vm431_vm1, %v419_v14  ;;  %s1939_s4 = sshll.u32 %s2051_s30, 4  ;;  %s1940_s4 = int_to_ptr.vmem [resolvable:$false] %s1939_s4 }
  0xc6   : > { %1580 = vmatmul.mubr.msk.f32.vlgmr.msra.gmra.mrb[0].mxu0 %vm431_vm1, %v418_v15  ;;  %1595 = vmatprep.mubr.msk.f32.mxu1 %vm2039_vm0, %v2040_v1  ;;  %p1942_p1 = scmp.lt.s32.totalorder %s2454_s7, %s1940_s4 }
  0xc7   : > { %1605 = vmatprep.mubr.msk.f32.mxu0 %vm2039_vm0, %v2040_v1 }
 0x198   : > { %v585_v17 = vpop.f32.mrb[0].mxu1 }
 0x199   : > { %v2390_v19 = vadd.f32 %v1520_v16, %v585_v17  ;;  %v1592_v20 = vpop.f32.mrb[1].mxu1  ;;  %v501_v21 = vpop.f32.mrb[0].mxu0 }
 0x19a   : > { %v1581_v22 = vpop.f32.mrb[1].mxu0  ;;  %v502_v23 = vadd.f32 %v1518_v18, %v501_v21  ;;  %v1269_v18 = vld [vmem:[#allocation11] sm:$0xff]  ;;  %v1271_v21 = vld [vmem:[#allocation11 + $0x10] sm:$0xff] }
 0x19b   : > { %928 = vrot.lane.b32.xlu1 %v2390_v19, %s2041_s27  ;;  %757 = vrot.lane.b32.xlu0 %v2390_v19, %s2042_s2  ;;  %v1272_v22 = vld [vmem:[#allocation11 + $0x18] sm:$0xff] }
 0x19c   : > { %1594 = vmatpush3.xpose.msk.msra.mxu1 %vm589_vm2, %v2390_v19 }
 0x19d   : > { %1598 = vmatprep.subr.mxu1 %v2040_v1 }
 0x19f   : > { %1596 = vmatmul.mubr.msk.f32.vlgmr.msra.gmra.mrb[2].mxu1 %vm589_vm2, %v502_v23  ;;  %926 = vrot.lane.b32.xlu1 %v502_v23, %s2041_s27 }
 0x1a0   : > { %755 = vrot.lane.b32.xlu0 %v502_v23, %s2042_s2  ;;  %1600 = vmatprep.mubr.msk.f32.mxu1 %vm2039_vm0, %v2040_v1  ;;  %s2543_s2 = sld [smem:[#allocation24_spill]] }
 0x1a3   : > { %1097 = vrot.lane.b32.xlu1 %v502_v23, %s2043_s24  ;;  %v1660_v23 = vpack.c.bf16 %v1272_v22, %v1271_v21 }
 0x1a4   : > { %1099 = vrot.lane.b32.xlu0 %v2390_v19, %s2043_s24 }
 0x1a6   : > { %s2452_s24 = scalar_lea.hbm %s2543_s2, %s1537_s11 }
 0x20d   : > { %v758_v24 = vpop.permute.xlu0 %757  ;;  %v929_v25 = vpop.permute.xlu1 %928 }
 0x20e   : > { %1604 = vmatpush3.xpose.msk.msra.mxu0 %vm589_vm2, %v758_v24 }
 0x20f   : > { %1613 = vmatprep.subr.mxu0 %v2040_v1 }
 0x211   : > { %v927_v27 = vpop.permute.xlu1 %926 }
 0x212   : > { %v756_v26 = vpop.permute.xlu0 %755 }
 0x213   : > { %1606 = vmatmul.mubr.msk.f32.vlgmr.msra.gmra.mrb[2].mxu0 %vm589_vm2, %v756_v26 }
 0x214   : > { %1614 = vmatpush3.xpose.msk.msra.mxu0 %vm589_vm2, %v929_v25  ;;  %1615 = vmatprep.mubr.msk.f32.mxu0 %vm2039_vm0, %v2040_v1 }
 0x215   : > { %1623 = vmatprep.subr.mxu0 %v2040_v1  ;;  %v1098_v29 = vpop.permute.xlu1 %1097 }
 0x216   : > { %v1100_v28 = vpop.permute.xlu0 %1099 }
 0x217   : > { %1616 = vmatmul.mubr.msk.f32.vlgmr.msra.gmra.mrb[4].mxu0 %vm589_vm2, %v927_v27 }
 0x218   : > { %1624 = vmatpush3.xpose.msk.msra.mxu0 %vm589_vm2, %v1100_v28  ;;  %1625 = vmatprep.mubr.msk.f32.mxu0 %vm2039_vm0, %v2040_v1 }
 0x219   : > { %1656 = vmatprep.subr.bf16.mxu0 %v2038_v0 }
 0x21b   : > { %1626 = vmatmul.mubr.msk.f32.vlgmr.msra.gmra.mrb[6].mxu0 %vm589_vm2, %v1098_v29 }
 0x21c   : > { %1641 = vmatprep.mubr.msk.f32.mxu0 %vm2039_vm0, %v2040_v1 }
 0x272   : > { %v662_v30 = vpop.f32.mrb[2].mxu1 }
 0x273   : > { %v1597_v31 = vpop.f32.mrb[3].mxu1  ;;  %v667_v32 = vsel %vm666_vm3, %v662_v30, -inf }
 0x274   : > { %668 = vmax.xlane.f32.xlu0 %v667_v32  ;;  %v1534_v32 = vld [vmem:[%s2542_s16] ss:$0 sm:$0xff] }
 0x2e6   : > { %v829_v33 = vpop.f32.mrb[2].mxu0 }
 0x2e7   : > { %v1607_v34 = vpop.f32.mrb[3].mxu0  ;;  %v833_v35 = vsel %vm666_vm3, %v829_v33, -inf }
 0x2e8   : > { %834 = vmax.xlane.f32.xlu1 %v833_v35 }
 0x2ea   : > { %v1000_v36 = vpop.f32.mrb[4].mxu0 }
 0x2eb   : > { %v1617_v37 = vpop.f32.mrb[5].mxu0  ;;  %v1004_v38 = vsel %vm666_vm3, %v1000_v36, -inf }
 0x2ec   : > { %1005 = vmax.xlane.f32.xlu0 %v1004_v38 }
 0x2ee   : > { %v1171_v39 = vpop.f32.mrb[6].mxu0 }
 0x2ef   : > { %v1627_v40 = vpop.f32.mrb[7].mxu0  ;;  %v1175_v41 = vsel %vm666_vm3, %v1171_v39, -inf }
 0x2f0   : > { %1176 = vmax.xlane.f32.xlu0 %v1175_v41 }
 0x2f9   : > { %678 = vrot.lane.b32.xlu1 %v2390_v19, %s2044_s6  ;;  %s1355_s6 = scalar_lea.sflag [#allocation5], %s2339_s26 }
 0x301   : > { %v669_v42 = vpop.xlane.xlu0 %668 }
 0x302   : > { %v670_v43 = vsub.f32 %v662_v30, %v669_v42 }
 0x304   : > { %v671_v44 = vmul.f32 1.442695, %v670_v43 }
 0x306   : > { %1775 = vpow2.f32 %v671_v44 }
 0x310   : > { %v1776_v45 = vpop.eup %1775 }
 0x311   : > { %v673_v46 = vsel %vm666_vm3, %v1776_v45, 0.0 }
 0x31d   : > { %674 = vadd.xlane.f32.xlu1 %v673_v46 }
 0x375   : > { %v835_v47 = vpop.xlane.xlu1 %834 }
 0x376   : > { %v836_v48 = vsub.f32 %v829_v33, %v835_v47 }
 0x378   : > { %v837_v49 = vmul.f32 1.442695, %v836_v48 }
 0x379   : > { %v679_v50 = vpop.permute.xlu1 %678  ;;  %v1006_v51 = vpop.xlane.xlu0 %1005 }
 0x37a   : > { %1777 = vpow2.f32 %v837_v49  ;;  %v1007_v52 = vsub.f32 %v1000_v36, %v1006_v51  ;;  %1599 = vmatpush3.msra.mxu1 %v679_v50 }
 0x37b   : > { %1608 = vmatprep.subr.mxu1 %v2040_v1 }
 0x37c   : > { %v1008_v53 = vmul.f32 1.442695, %v1007_v52 }
 0x37d   : > { %v1177_v54 = vpop.xlane.xlu0 %1176 }
 0x37e   : > { %1779 = vpow2.f32 %v1008_v53  ;;  %v1178_v55 = vsub.f32 %v1171_v39, %v1177_v54 }
 0x380   : > { %v1179_v56 = vmul.f32 1.442695, %v1178_v55 }
 0x382   : > { %1781 = vpow2.f32 %v1179_v56 }
 0x384   : > { %v1778_v57 = vpop.eup %1777 }
 0x385   : > { %v839_v58 = vsel %vm666_vm3, %v1778_v57, 0.0 }
 0x386   : > { %840 = vadd.xlane.f32.xlu0 %v839_v58 }
 0x388   : > { %v1780_v59 = vpop.eup %1779 }
 0x389   : > { %v1010_v60 = vsel %vm666_vm3, %v1780_v59, 0.0 }
 0x38a   : > { %1011 = vadd.xlane.f32.xlu1 %v1010_v60 }
 0x38c   : > { %v1782_v61 = vpop.eup %1781 }
 0x38d   : > { %v1181_v62 = vsel %vm666_vm3, %v1782_v61, 0.0 }
 0x38e   : > { %1182 = vadd.xlane.f32.xlu0 %v1181_v62 }
 0x39b   : > { %1015 = vrot.lane.b32.xlu1 %v2390_v19, %s2045_s22  ;;  %s1935_s22 = scalar_lea.vmem %s2454_s7, 128 }
 0x39c   : > { %p1936_p0 = scmp.ne.s32.totalorder %s2454_s7, %s1935_s22 }
 0x39e   : > { %p1937_p4 = pnand %p1936_p0, %p2544_p2 }
 0x39f   : > { %1186 = vrot.lane.b32.xlu1 %v2390_v19, %s2046_s19  ;;  %s1941_s19 = scalar_lea.vmem %s1940_s4, 256 }
 0x3a0   : > { %p1938_p8 = pneg %p1937_p4  ;;  %p1943_p13 = scmp.lt.s32.totalorder %s1941_s19, %s1935_s22 }
 0x3a2   : > { %p1944_p3 = por %p1943_p13, %p1942_p1 }
 0x3a4   : > { %844 = vrot.lane.b32.xlu0 %v2390_v19, %s2047_s23  ;;  %v1270_v19 = vld [vmem:[#allocation11 + $0x8] sm:$0xff]  ;;  %p1945_p5 = pnand %p1944_p3, %p1938_p8 }
 0x3a5   : > { %v1657_v20 = vpack.c.bf16 %v1270_v19, %v1269_v18 }
 0x3a7   : > { %1658 = vmatpush3.bf16.msra.mxu0 %v1657_v20 }
 0x3a8   : > { %1659 = vmatprep.subr.bf16.mxu0 %v2038_v0 }
 0x3aa   : > { %v675_v63 = vpop.xlane.xlu1 %674 }
 0x3ab   : > { %1783 = vrcp.f32 %v675_v63  ;;  %1661 = vmatpush3.bf16.msra.mxu0 %v1660_v23 }
 0x3b5   : > { %v1784_v2 = vpop.eup %1783 }
 0x3b6   : > { %v677_v3 = vmul.f32 %v1784_v2, %v1776_v45 }
 0x3b8   : > { %1601 = vmatmul.mubr.msk.f32.vlgmr.msra.gmra.mrb[4].mxu1 %vm666_vm3, %v677_v3 }
 0x3b9   : > { %1610 = vmatprep.mubr.msk.f32.mxu1 %vm2039_vm0, %v2040_v1 }
 0x413   : > { %v841_v4 = vpop.xlane.xlu0 %840 }
 0x414   : > { %1785 = vrcp.f32 %v841_v4 }
 0x417   : > { %v1012_v5 = vpop.xlane.xlu1 %1011 }
 0x418   : > { %1787 = vrcp.f32 %v1012_v5 }
 0x41b   : > { %v1183_v6 = vpop.xlane.xlu0 %1182  ;;  %v1016_v9 = vpop.permute.xlu1 %1015 }
 0x41c   : > { %1789 = vrcp.f32 %v1183_v6 }
 0x41e   : > { %v1786_v7 = vpop.eup %1785 }
 0x41f   : > { %v843_v8 = vmul.f32 %v1786_v7, %v1778_v57  ;;  %v845_v10 = vpop.permute.xlu0 %844  ;;  %v1187_v13 = vpop.permute.xlu1 %1186 }
 0x420   : > { %1609 = vmatpush3.msra.mxu1 %v845_v10 }
 0x421   : > { %1611 = vmatmul.mubr.msk.f32.vlgmr.msra.gmra.mrb[6].mxu1 %vm666_vm3, %v843_v8  ;;  %1618 = vmatprep.subr.mxu1 %v2040_v1 }
 0x422   : > { %v1788_v11 = vpop.eup %1787  ;;  %1619 = vmatpush3.msra.mxu1 %v1016_v9  ;;  %1620 = vmatprep.mubr.msk.f32.mxu1 %vm2039_vm0, %v2040_v1 }
 0x423   : > { %v1014_v12 = vmul.f32 %v1788_v11, %v1780_v59  ;;  %1628 = vmatprep.subr.mxu1 %v2040_v1 }
 0x425   : > { %1621 = vmatmul.mubr.msk.f32.vlgmr.msra.gmra.mrb[8].mxu1 %vm666_vm3, %v1014_v12 }
 0x426   : > { %v1790_v14 = vpop.eup %1789  ;;  %1629 = vmatpush3.msra.mxu1 %v1187_v13  ;;  %1630 = vmatprep.mubr.msk.f32.mxu1 %vm2039_vm0, %v2040_v1 }
 0x427   : > { %v1185_v15 = vmul.f32 %v1790_v14, %v1782_v61 }
 0x429   : > { %1631 = vmatmul.mubr.msk.f32.vlgmr.msra.gmra.mrb[10].mxu1 %vm666_vm3, %v1185_v15 }
 0x48b   : > { %v750_v16 = vpop.f32.mrb[4].mxu1 }
 0x48c   : > { %754 = vst.msk [vmem:[#allocation2] sm:$0xff] %vm666_vm3, %v750_v16  ;;  %v1602_v17 = vpop.f32.mrb[5].mxu1 }
 0x4f4   : > { %v916_v24 = vpop.f32.mrb[6].mxu1 }
 0x4f5   : > { %921 = vrot.lane.b32.xlu0 %v916_v24, %s2048_s14  ;;  %v1612_v1 = vpop.f32.mrb[7].mxu1 }
 0x4f8   : > { %v1087_v25 = vpop.f32.mrb[8].mxu1 }
 0x4f9   : > { %1092 = vrot.lane.b32.xlu1 %v1087_v25, %s2049_s21  ;;  %v1622_v26 = vpop.f32.mrb[9].mxu1 }
 0x4fc   : > { %v1258_v27 = vpop.f32.mrb[10].mxu1 }
 0x4fd   : > { %1263 = vrot.lane.b32.xlu0 %v1258_v27, %s2050_s20  ;;  %v1632_v28 = vpop.f32.mrb[11].mxu1 }
 0x567   : > { %v922_v29 = vpop.permute.xlu0 %921 }
 0x568   : > { %925 = vst.msk [vmem:[#allocation2] sm:$0xff] %vm924_vm4, %v922_v29 }
 0x56b   : > { %v1093_v0 = vpop.permute.xlu1 %1092 }
 0x56c   : > { %1096 = vst.msk [vmem:[#allocation2] sm:$0xff] %vm1095_vm5, %v1093_v0 }
 0x56f   : > { %v1264_v30 = vpop.permute.xlu0 %1263 }
 0x570   : > { %1267 = vst.msk [vmem:[#allocation2] sm:$0xff] %vm1266_vm6, %v1264_v30 }
 0x577   : > { %v1268_v31 = vld [vmem:[#allocation2] sm:$0xff] }
 0x578   : > { %1642 = vmatmul.mubr.msk.f32.vlgmr.msra.gmra.mrb[8].mxu0 %vm431_vm1, %v1268_v31 }
 0x64b   : > { %v1349_v33 = vpop.f32.mrb[8].mxu0 }
 0x64c   : > { %v1350_v34 = vadd.f32 %v1534_v32, %v1349_v33  ;;  %v1643_v35 = vpop.f32.mrb[9].mxu0 }
 0x64e   : > { %1353 = vst.msk [vmem:[%s417_s13] sm:$0xff] %vm431_vm1, %v1350_v34 }
 0x64f   : > { %1948 = shalt.err (!%p1945_p5)
}
 0x650   : > { %s1949_s26 = scalar_lea.hbm %s2452_s24, 128  ;;  %s1953_s21 = scalar_lea.hbm %s2543_s2, 256 }
 0x651   : > { %p1950_p6 = scmp.ne.s32.totalorder %s2452_s24, %s1949_s26  ;;  %p1954_p12 = scmp.lt.u32.totalorder %s2452_s24, %s2543_s2 }
 0x652   : > { %p1955_p11 = scmp.lt.u32.totalorder %s1953_s21, %s1949_s26  ;;  %p1957_p0 = scmp.lt.u32.totalorder %s1949_s26, %s2452_s24 }
 0x653   : > { %p1951_p10 = pnand %p1950_p6, %p2544_p2 }
 0x654   : > { %p1956_p9 = por %p1955_p11, %p1954_p12 }
 0x655   : > { %p1952_p7 = pneg %p1951_p10 }
 0x656   : > { %p1958_p4 = por %p1957_p0, %p1956_p9 }
 0x658   : > { %p1959_p8 = pnand %p1958_p4, %p1952_p7 }
 0x65a   : > { %1962 = shalt.err (!%p1959_p8)
}
 0x65b   : > { %1678 = dma.vmem_to_hbm [thread:$0]  (%p2544_p2), %s2454_s7, 128, %s2452_s24, %s1355_s6  }
 0x65c PF: > { %s2545_s17 = sld [smem:[#allocation18_spill]]  ;;  %s2546_s16 = sld [smem:[#allocation19_spill]] }
 0x65d   : > { %p2548_p13 = scmp.ge.s32.totalorder %s2029_s10, 2 }
 0x662   : > { %s1381_s11 = sand.u32 1, %s2545_s17   ;;  %p2547_p1 = scmp.ne.s32.totalorder %s2546_s16, 0 }
 0x663   : > { %s1382_s13 = scalar_lea.sflag [#allocation5], %s1381_s11 }
 0x664   : > { %p1698_p3 = pnand %p2548_p13, %p2547_p1 }
 0x666   : > { %2004 = dma.done.wait (!%p1698_p3), %s1382_s13, 128  }
 0x667   : > { %2006 = vsyncadd (!%p1698_p3), %s1382_s13, 4294967168  ;;  %s28_s10 = sadd.s32 1, %s2029_s10   ;;  %s2549_s27 = smov %s2013_s28 }
 0x668   : > { %p25_p5 = scmp.ge.s32.totalorder %s28_s10, 4   ;;  %s2550_s28 = smov %s2017_s29 }
 0x669   : > { %s2551_s29 = smov %s2267_s25  ;;  %s2552_s30 = smov %s2025_s9 }
 0x66a   : > { %s2553_s9 = smov %s2555_s18  ;;  %27 = sbr.rel (!%p25_p5) target bundleno = 15 (0xf), region = 122 }
 0x671   :  { %1387 = vsyncpa [#allocation4], 1 }
 0x672   :  { %1389 = vsyncpa [#allocation4 + $0x1], 1 }
 0x673   :  { %1390 = vsyncpa [#allocation7], 1 }
 0x674   :  { %1392 = vsyncpa [#allocation7 + $0x1], 1 }
 0x675   :  { %1393 = vsyncpa [#allocation10], 1 }
 0x676   :  { %1394 = vsyncpa [#allocation5], 1 }
 0x677   :  { %1396 = vsyncpa [#allocation5 + $0x1], 1 }

</bundles_post_ra>
